<compile_context>
chip_gen: v7x
topology: tpu7x:2x2x1
jax: 0.10.0
libtpu: 0.0.40
codegen_flags: <defaults>
</compile_context>

<pallas_src>
import functools

import numpy as np
import jax
import jax.numpy as jnp
from jax import lax
from jax.experimental import pallas as pl
from jax.experimental.pallas import tpu as pltpu

# --- config constants (values from benchmark/config_graph.json of the repo) ---
NUM_ATOM_TYPE = 120
NUM_CHIRALITY_TAG = 3
NUM_BOND_TYPE = 6
NUM_BOND_DIRECTION = 3

LANE = 128
SUBLANE = 8


def _round_up(x, m):
    return (x + m - 1) // m * m


def _pad(x, target_shape):
    return jnp.pad(x, [(0, t - s) for s, t in zip(x.shape, target_shape)])


def _vmem_capacity_bytes():
    try:
        return int(pltpu.get_tpu_info().vmem_capacity_bytes)
    except Exception:
        return 64 * 1024 * 1024          # conservative (v7x-sized) fallback


def _pick_tk(n_pad, vmem_cap):
    # Contraction tile of A @ h.  Larger tiles amortise per-step overhead;
    # v7x's 64 MiB VMEM prefers 256.  Finer tiles skip more zero blocks.
    max_tk = 512 if vmem_cap >= (96 << 20) else 256
    for cand in (max_tk, 256, 128):
        if cand <= n_pad and n_pad % cand == 0:
            return cand
    return n_pad


# ----------------------------- fused Pallas kernel -----------------------------

def fused_gnn_kernel(blk_ref,                     # SMEM: source K-block id per compacted A block
                     h0_hbm, a_ref, esum_ref,
                     w1_ref, b1_ref, w2_ref, b2_ref, gamma_ref, beta_ref,
                     p_ref, wp_ref, bp_ref,
                     out_ref,
                     h_vmem, acc_vmem,
                     *, num_layer, n_valid, tk, row_tile, a_resident, eps=1e-5):
    l = pl.program_id(0)          # layer axis (sequential: h carried in VMEM)
    k = pl.program_id(1)          # compacted nonzero K block of the aggregation
    nk = pl.num_programs(1)

    # one-time copy of the initial node embeddings HBM -> resident VMEM buffer
    @pl.when(jnp.logical_and(l == 0, k == 0))
    def _init_h():
        pltpu.sync_copy(h0_hbm, h_vmem)

    # start of every layer: seed the accumulator with the edge-embedding sums
    # (replaces zero-init + a full-array f32 add in the epilogue)
    @pl.when(k == 0)
    def _init_acc():
        acc_vmem[...] = esum_ref[0]

    # partial aggregation: A[:, block] @ h[block].  Every grid block is
    # nonzero by construction (zero blocks were compacted away on the host).
    a_blk = a_ref[k] if a_resident else a_ref[0]              # bf16 [n_pad, tk]
    src0 = pl.multiple_of(blk_ref[k] * tk, tk)
    acc_vmem[...] += jnp.dot(a_blk, h_vmem[pl.ds(src0, tk), :],
                             preferred_element_type=jnp.float32)

    # layer epilogue: row-tiled GIN MLP, BatchNorm, ReLU, (pool + predict)
    @pl.when(k == nk - 1)
    def _finish_layer():
        w1 = w1_ref[0]
        b1 = b1_ref[0]
        w2 = w2_ref[0]
        b2 = b2_ref[0]
        n_row_blocks = acc_vmem.shape[0] // row_tile

        # MLP(aggr) written back in place into acc_vmem: the [row_tile, 2*emb]
        # f32 hidden activation only ever lives for one row block.
        def mlp_blk(i, carry):
            r0 = pl.multiple_of(i * row_tile, row_tile)
            aggr = acc_vmem[pl.ds(r0, row_tile), :]
            hid = jnp.dot(aggr.astype(jnp.bfloat16), w1,
                          preferred_element_type=jnp.float32) + b1
            hid = jnp.maximum(hid, 0.0)
            z_blk = jnp.dot(hid.astype(jnp.bfloat16), w2,
                            preferred_element_type=jnp.float32) + b2
            acc_vmem[pl.ds(r0, row_tile), :] = z_blk
            return carry

        lax.fori_loop(0, n_row_blocks, mlp_blk, 0)

        # BatchNorm1d: training-mode biased batch stats over valid node rows
        # (a freshly constructed torch module runs in train() mode).
        z = acc_vmem[...]
        row_ids = lax.broadcasted_iota(jnp.int32, z.shape, 0)
        mask = (row_ids < n_valid).astype(jnp.float32)
        inv_n = 1.0 / float(n_valid)
        zm = z * mask
        mean = jnp.sum(zm, axis=0, keepdims=True) * inv_n
        ex2 = jnp.sum(zm * zm, axis=0, keepdims=True) * inv_n
        var = jnp.maximum(ex2 - mean * mean, 0.0)
        zn = (z - mean) * lax.rsqrt(var + eps) * gamma_ref[0] + beta_ref[0]

        is_last = l == num_layer - 1
        # ReLU on all layers except the last (drop_ratio=0 -> dropout = identity)
        h_vmem[...] = jnp.where(is_last, zn,
                                jnp.maximum(zn, 0.0)).astype(jnp.bfloat16)

        # fused global mean pool + graph_pred_linear (bf16 MXU, f32 accumulate)
        @pl.when(is_last)
        def _pool_pred():
            g = jnp.dot(p_ref[...], h_vmem[...],
                        preferred_element_type=jnp.float32)
            out_ref[...] = jnp.dot(g.astype(jnp.bfloat16), wp_ref[...],
                                   preferred_element_type=jnp.float32) + bp_ref[...]


# ----------------------------- params -----------------------------

def init_params(key, num_layer, emb_dim, num_tasks):
    L, D = num_layer, emb_dim
    ks = jax.random.split(key, 7)

    def xavier(k, shape):
        fan_in, fan_out = shape[-2], shape[-1]
        bound = (6.0 / (fan_in + fan_out)) ** 0.5
        return jax.random.uniform(k, shape, jnp.float32, -bound, bound)

    return {
        "x_emb1": xavier(ks[0], (NUM_ATOM_TYPE, D)),
        "x_emb2": xavier(ks[1], (NUM_CHIRALITY_TAG, D)),
        # per-layer params stacked along a leading layer dimension
        "edge_emb1": xavier(ks[2], (L, NUM_BOND_TYPE, D)),
        "edge_emb2": xavier(ks[3], (L, NUM_BOND_DIRECTION, D)),
        # GIN MLP: Linear(D, 2D) / Linear(2D, D), stored [in, out]
        "w1": xavier(ks[4], (L, D, 2 * D)),
        "b1": jnp.zeros((L, 1, 2 * D), jnp.float32),
        "w2": xavier(ks[5], (L, 2 * D, D)),
        "b2": jnp.zeros((L, 1, D), jnp.float32),
        # BatchNorm1d init: gamma=1, beta=0
        "gamma": jnp.ones((L, 1, D), jnp.float32),
        "beta": jnp.zeros((L, 1, D), jnp.float32),
        # graph_pred_linear, stored [in, out]
        "wp": xavier(ks[6], (D, num_tasks)),
        "bp": jnp.zeros((1, num_tasks), jnp.float32),
    }


# ----------------------------- forward -----------------------------

def gnn_graphpred_forward(params, x, edge_index, edge_attr, batch, num_graphs):
    N = x.shape[0]
    L, D, H = params["w1"].shape
    T = params["wp"].shape[1]

    vmem_cap = _vmem_capacity_bytes()
    n_pad = _round_up(max(N, SUBLANE), LANE)
    d_pad = _round_up(D, LANE)
    h_pad = _round_up(H, LANE)
    g_pad = _round_up(max(num_graphs, 1), SUBLANE)
    t_pad = _round_up(T, LANE)
    tk = _pick_tk(n_pad, vmem_cap)
    k_tiles = n_pad // tk
    row_tile = 256 if n_pad % 256 == 0 else 128

    # --- JAX glue: embedding gathers, self-loops, dense A, per-layer edge sums
    h0 = jnp.take(params["x_emb1"], x[:, 0], axis=0) + \
         jnp.take(params["x_emb2"], x[:, 1], axis=0)

    self_idx = jnp.arange(N, dtype=edge_index.dtype)
    src = jnp.concatenate([edge_index[0], self_idx])
    tgt = jnp.concatenate([edge_index[1], self_idx])
    # GINConv self-loop edge_attr is all-zeros per the reference (only GCNConv
    # sets bond-type 4 for self loops).
    edge_attr_full = jnp.concatenate(
        [edge_attr, jnp.zeros((N, 2), edge_attr.dtype)], axis=0)

    # dense aggregation matrix A[t, s] = number of edges s->t (incl. self-loops)
    A = jnp.zeros((N, N), jnp.float32).at[tgt, src].add(1.0)

    # all layers' per-node edge-embedding sums in one batched gather + scatter
    e_emb = jnp.take(params["edge_emb1"], edge_attr_full[:, 0], axis=1) + \
            jnp.take(params["edge_emb2"], edge_attr_full[:, 1], axis=1)   # [L,E',D]
    esum = jnp.zeros((L, N, D), jnp.float32).at[:, tgt].add(e_emb)

    # mean-pool matrix P[g, i] = 1/count_g if batch[i] == g
    onehot = (batch[None, :] == jnp.arange(num_graphs)[:, None]).astype(jnp.float32)
    P = onehot / jnp.maximum(onehot.sum(axis=1, keepdims=True), 1.0)

    # --- A: pad, pre-block into contiguous (k, n_pad, tk) tiles, and compact
    # away all-zero K blocks (host-side; this wrapper is not jitted).
    A_pad = _pad(A, (n_pad, n_pad))
    A_blocked = A_pad.reshape(n_pad, k_tiles, tk).transpose(1, 0, 2)   # [k,n,tk]
    nz = np.flatnonzero(np.asarray(jnp.any(A_blocked != 0.0, axis=(1, 2))))
    if nz.size == 0:
        nz = np.array([0])
    nk = int(nz.size)
    blk_ids = jnp.asarray(nz, dtype=jnp.int32)                 # scalar prefetch
    A_c = A_blocked[blk_ids].astype(jnp.bfloat16)              # [nk, n_pad, tk]

    # --- pad to lane/sublane-friendly shapes; bf16 for all MXU operands
    h0_p = _pad(h0, (n_pad, d_pad)).astype(jnp.bfloat16)
    esum_p = _pad(esum, (L, n_pad, d_pad))
    w1_p = _pad(params["w1"], (L, d_pad, h_pad)).astype(jnp.bfloat16)
    b1_p = _pad(params["b1"], (L, 1, h_pad))
    w2_p = _pad(params["w2"], (L, h_pad, d_pad)).astype(jnp.bfloat16)
    b2_p = _pad(params["b2"], (L, 1, d_pad))
    gamma_p = _pad(params["gamma"], (L, 1, d_pad))
    beta_p = _pad(params["beta"], (L, 1, d_pad))
    P_p = _pad(P, (g_pad, n_pad)).astype(jnp.bfloat16)
    wp_p = _pad(params["wp"], (d_pad, t_pad)).astype(jnp.bfloat16)
    bp_p = _pad(params["bp"], (1, t_pad))

    # --- generation-aware VMEM budget and A-residency decision
    vmem_limit = max(32 << 20,
                     min(vmem_cap - (16 << 20), vmem_cap * 85 // 100))
    a_bytes = nk * n_pad * tk * 2
    fixed_bytes = (n_pad * d_pad * 6                    # h_vmem (bf16) + acc (f32)
                   + 2 * n_pad * d_pad * 4              # esum double buffer
                   + 2 * g_pad * n_pad * 2              # P double buffer
                   + 4 * d_pad * h_pad * 2              # w1/w2 double buffers
                   + 3 * n_pad * d_pad * 4              # epilogue temps headroom
                   + (2 << 20))
    a_resident = fixed_bytes + 2 * a_bytes <= (vmem_limit * 9) // 10

    if a_resident:
        # constant-index full block: DMA'd exactly once, reused by every layer
        a_spec = pl.BlockSpec((nk, n_pad, tk), lambda l, k, blk: (0, 0, 0))
    else:
        # stream one contiguous K block per grid step (double-buffered)
        a_spec = pl.BlockSpec((1, n_pad, tk), lambda l, k, blk: (k, 0, 0))

    kernel = functools.partial(
        fused_gnn_kernel, num_layer=L, n_valid=N, tk=tk,
        row_tile=row_tile, a_resident=a_resident)

    out_pad = pl.pallas_call(
        kernel,
        out_shape=jax.ShapeDtypeStruct((g_pad, t_pad), jnp.float32),
        grid_spec=pltpu.PrefetchScalarGridSpec(
            num_scalar_prefetch=1,
            grid=(L, nk),
            in_specs=[
                pl.BlockSpec(memory_space=pl.ANY),                             # h0 (HBM, copied once)
                a_spec,                                                        # A (compacted blocks)
                pl.BlockSpec((1, n_pad, d_pad), lambda l, k, blk: (l, 0, 0)),  # esum
                pl.BlockSpec((1, d_pad, h_pad), lambda l, k, blk: (l, 0, 0)),  # w1
                pl.BlockSpec((1, 1, h_pad),     lambda l, k, blk: (l, 0, 0)),  # b1
                pl.BlockSpec((1, h_pad, d_pad), lambda l, k, blk: (l, 0, 0)),  # w2
                pl.BlockSpec((1, 1, d_pad),     lambda l, k, blk: (l, 0, 0)),  # b2
                pl.BlockSpec((1, 1, d_pad),     lambda l, k, blk: (l, 0, 0)),  # gamma
                pl.BlockSpec((1, 1, d_pad),     lambda l, k, blk: (l, 0, 0)),  # beta
                pl.BlockSpec((g_pad, n_pad),    lambda l, k, blk: (0, 0)),     # P
                pl.BlockSpec((d_pad, t_pad),    lambda l, k, blk: (0, 0)),     # wp
                pl.BlockSpec((1, t_pad),        lambda l, k, blk: (0, 0)),     # bp
            ],
            out_specs=pl.BlockSpec((g_pad, t_pad), lambda l, k, blk: (0, 0)),
            scratch_shapes=[
                pltpu.VMEM((n_pad, d_pad), jnp.bfloat16),   # resident node feats h
                pltpu.VMEM((n_pad, d_pad), jnp.float32),    # aggregation / z buffer
            ]),
        compiler_params=pltpu.CompilerParams(
            # both grid axes carry sequential deps (layer chain, K-accumulate)
            dimension_semantics=("arbitrary", "arbitrary"),
            vmem_limit_bytes=int(vmem_limit)),
    )(blk_ids, h0_p, A_c, esum_p, w1_p, b1_p, w2_p, b2_p,
      gamma_p, beta_p, P_p, wp_p, bp_p)

    # TODO(synk): v7x dual-TensorCore sharding (core_map over node rows) not
    # implemented; kernel runs on a single TC.
    return out_pad[:num_graphs, :T]


# ----------------------------- pure-JAX reference -----------------------------

def reference_forward(params, x, edge_index, edge_attr, batch, num_graphs, eps=1e-5):
    N = x.shape[0]
    L = params["w1"].shape[0]
    h = jnp.take(params["x_emb1"], x[:, 0], axis=0) + \
        jnp.take(params["x_emb2"], x[:, 1], axis=0)
    self_idx = jnp.arange(N, dtype=edge_index.dtype)
    src = jnp.concatenate([edge_index[0], self_idx])
    tgt = jnp.concatenate([edge_index[1], self_idx])
    ea = jnp.concatenate([edge_attr, jnp.zeros((N, 2), edge_attr.dtype)], axis=0)
    for l in range(L):
        e_emb = jnp.take(params["edge_emb1"][l], ea[:, 0], axis=0) + \
                jnp.take(params["edge_emb2"][l], ea[:, 1], axis=0)
        aggr = jnp.zeros_like(h).at[tgt].add(h[src] + e_emb)
        hid = jnp.maximum(aggr @ params["w1"][l] + params["b1"][l], 0.0)
        z = hid @ params["w2"][l] + params["b2"][l]
        mean = z.mean(axis=0, keepdims=True)
        var = ((z - mean) ** 2).mean(axis=0, keepdims=True)
        z = (z - mean) / jnp.sqrt(var + eps) * params["gamma"][l] + params["beta"][l]
        h = z if l == L - 1 else jnp.maximum(z, 0.0)
    onehot = (batch[None, :] == jnp.arange(num_graphs)[:, None]).astype(jnp.float32)
    P = onehot / jnp.maximum(onehot.sum(axis=1, keepdims=True), 1.0)
    return (P @ h) @ params["wp"] + params["bp"]


# ----------------------------- main -----------------------------

if __name__ == "__main__":
    N = 16          # num nodes
    E = 24          # num edges (before self-loops)
    D = 32          # emb_dim
    NUM_LAYER = 2
    NUM_TASKS = 4
    NUM_GRAPHS = 2

    key = jax.random.PRNGKey(0)
    k_param, k_x0, k_x1, k_src, k_tgt, k_ea0, k_ea1 = jax.random.split(key, 7)

    params = init_params(k_param, NUM_LAYER, D, NUM_TASKS)

    # synthetic molecular-graph style inputs
    x = jnp.stack([
        jax.random.randint(k_x0, (N,), 0, NUM_ATOM_TYPE),
        jax.random.randint(k_x1, (N,), 0, NUM_CHIRALITY_TAG),
    ], axis=1).astype(jnp.int32)
    edge_index = jnp.stack([
        jax.random.randint(k_src, (E,), 0, N),
        jax.random.randint(k_tgt, (E,), 0, N),
    ], axis=0).astype(jnp.int32)
    edge_attr = jnp.stack([
        jax.random.randint(k_ea0, (E,), 0, NUM_BOND_TYPE),
        jax.random.randint(k_ea1, (E,), 0, NUM_BOND_DIRECTION),
    ], axis=1).astype(jnp.int32)
    batch = jnp.concatenate([jnp.zeros(N // 2, jnp.int32),
                             jnp.ones(N - N // 2, jnp.int32)])

    out = gnn_graphpred_forward(params, x, edge_index, edge_attr, batch, NUM_GRAPHS)
    out = jax.block_until_ready(out)
    ref = jax.block_until_ready(
        reference_forward(params, x, edge_index, edge_attr, batch, NUM_GRAPHS))

    assert out.shape == (NUM_GRAPHS, NUM_TASKS), out.shape
    assert jnp.all(jnp.isfinite(out))
    # loose tolerance: kernel uses bf16 MXU operands vs f32 reference
    np.testing.assert_allclose(np.asarray(out), np.asarray(ref),
                               rtol=1e-1, atol=1e-1)
    print("KERNEL_OK")
</pallas_src>

<mosaic_0001>
module attributes {stable_mosaic.version = 11 : i64} {
  func.func @fused_gnn_kernel(%arg0: i32, %arg1: i32, %arg2: memref<1xi32, #tpu.memory_space<smem>>, %arg3: memref<128x128xbf16, #tpu.memory_space<any>>, %arg4: memref<1x128x128xbf16, #tpu.memory_space<vmem>>, %arg5: memref<1x128x128xf32, #tpu.memory_space<vmem>>, %arg6: memref<1x128x128xbf16, #tpu.memory_space<vmem>>, %arg7: memref<1x1x128xf32, #tpu.memory_space<vmem>>, %arg8: memref<1x128x128xbf16, #tpu.memory_space<vmem>>, %arg9: memref<1x1x128xf32, #tpu.memory_space<vmem>>, %arg10: memref<1x1x128xf32, #tpu.memory_space<vmem>>, %arg11: memref<1x1x128xf32, #tpu.memory_space<vmem>>, %arg12: memref<8x128xbf16, #tpu.memory_space<vmem>>, %arg13: memref<128x128xbf16, #tpu.memory_space<vmem>>, %arg14: memref<1x128xf32, #tpu.memory_space<vmem>>, %arg15: memref<8x128xf32, #tpu.memory_space<vmem>>, %arg16: memref<128x128xbf16, #tpu.memory_space<vmem>>, %arg17: memref<128x128xf32, #tpu.memory_space<vmem>>) attributes {dimension_semantics = [#tpu.dimension_semantics<arbitrary>, #tpu.dimension_semantics<arbitrary>], iteration_bounds = array<i64: 2, 1>, scalar_prefetch = 1 : i64, scratch_operands = 2 : i64, tpu.core_type = #tpu.core_type<tc>, window_params = [{}, {pipeline_mode = #tpu.pipeline_mode<synchronous>, transform_indices = @transform_1, window_bounds = array<i64: 1, 128, 128>}, {transform_indices = @transform_2, window_bounds = array<i64: 1, 128, 128>}, {transform_indices = @transform_3, window_bounds = array<i64: 1, 128, 128>}, {transform_indices = @transform_4, window_bounds = array<i64: 1, 1, 128>}, {transform_indices = @transform_5, window_bounds = array<i64: 1, 128, 128>}, {transform_indices = @transform_6, window_bounds = array<i64: 1, 1, 128>}, {transform_indices = @transform_7, window_bounds = array<i64: 1, 1, 128>}, {transform_indices = @transform_8, window_bounds = array<i64: 1, 1, 128>}, {pipeline_mode = #tpu.pipeline_mode<synchronous>, transform_indices = @transform_9, window_bounds = array<i64: 8, 128>}, {pipeline_mode = #tpu.pipeline_mode<synchronous>, transform_indices = @transform_10, window_bounds = array<i64: 128, 128>}, {pipeline_mode = #tpu.pipeline_mode<synchronous>, transform_indices = @transform_11, window_bounds = array<i64: 1, 128>}, {pipeline_mode = #tpu.pipeline_mode<synchronous>, transform_indices = @transform_12, window_bounds = array<i64: 8, 128>}]} {
    %c0_i32 = arith.constant 0 : i32
    %0 = arith.cmpi eq, %arg0, %c0_i32 : i32
    %c0_i32_0 = arith.constant 0 : i32
    %1 = arith.cmpi eq, %arg1, %c0_i32_0 : i32
    %2 = arith.andi %0, %1 : i1
    %3 = arith.extui %2 : i1 to i32
    %c0_i32_1 = arith.constant 0 : i32
    %4 = arith.cmpi ne, %3, %c0_i32_1 : i32
    scf.if %4 {
      "tpu.region"() ({
        %24 = tpu.sem_alloc : memref<!tpu.dma_semaphore, #tpu.memory_space<semaphore_mem>>
        tpu.enqueue_dma source(%arg3 : memref<128x128xbf16, #tpu.memory_space<any>>) target(%arg16 : memref<128x128xbf16, #tpu.memory_space<vmem>>) target_semaphore(%24 : memref<!tpu.dma_semaphore, #tpu.memory_space<semaphore_mem>>)
        tpu.wait_dma2 semaphore(%24 : memref<!tpu.dma_semaphore, #tpu.memory_space<semaphore_mem>>) src(%arg3 : memref<128x128xbf16, #tpu.memory_space<any>>) dst(%arg16 : memref<128x128xbf16, #tpu.memory_space<vmem>>)
        tpu.yield
      }) : () -> ()
    } else {
    }
    %c0_i32_2 = arith.constant 0 : i32
    %5 = arith.cmpi eq, %arg1, %c0_i32_2 : i32
    %6 = arith.extui %5 : i1 to i32
    %c0_i32_3 = arith.constant 0 : i32
    %7 = arith.cmpi ne, %6, %c0_i32_3 : i32
    scf.if %7 {
      %c0_12 = arith.constant 0 : index
      %c0_13 = arith.constant 0 : index
      %c0_14 = arith.constant 0 : index
      %24 = vector.load %arg5[%c0_12, %c0_13, %c0_14] : memref<1x128x128xf32, #tpu.memory_space<vmem>>, vector<1x128x128xf32>
      %25 = vector.shape_cast %24 : vector<1x128x128xf32> to vector<128x128xf32>
      %c0_15 = arith.constant 0 : index
      %c0_16 = arith.constant 0 : index
      %26 = vector.load %arg17[%c0_15, %c0_16] : memref<128x128xf32, #tpu.memory_space<vmem>>, vector<128x128xf32>
      tpu.vector_store %arg17[%c0_15, %c0_16], %25 {strides = array<i32>} : memref<128x128xf32, #tpu.memory_space<vmem>>, vector<128x128xf32>,
    } else {
    }
    %8 = arith.index_cast %arg1 : i32 to index
    %c0 = arith.constant 0 : index
    %c0_4 = arith.constant 0 : index
    %9 = vector.load %arg4[%8, %c0, %c0_4] : memref<1x128x128xbf16, #tpu.memory_space<vmem>>, vector<1x128x128xbf16>
    %10 = vector.shape_cast %9 : vector<1x128x128xbf16> to vector<128x128xbf16>
    %11 = arith.index_cast %arg1 : i32 to index
    %12 = memref.load %arg2[%11] : memref<1xi32, #tpu.memory_space<smem>>
    %c128_i32 = arith.constant 128 : i32
    %13 = arith.muli %12, %c128_i32 : i32
    %14 = tpu.assume_multiple %13, 128 : i32
    %c0_5 = arith.constant 0 : index
    %c0_6 = arith.constant 0 : index
    %15 = vector.load %arg17[%c0_5, %c0_6] : memref<128x128xf32, #tpu.memory_space<vmem>>, vector<128x128xf32>
    %16 = arith.index_cast %14 : i32 to index
    %c0_7 = arith.constant 0 : index
    %17 = vector.load %arg16[%16, %c0_7] : memref<128x128xbf16, #tpu.memory_space<vmem>>, vector<128x128xbf16>
    %cst = arith.constant dense<0.000000e+00> : vector<128x128xf32>
    %18 = tpu.matmul %10, %17, %cst {dimension_numbers = #tpu.dot_dimension_numbers<[1], [0], [0], [1], [0, 0, 1, 1], [], []>} : vector<128x128xbf16>, vector<128x128xbf16>, vector<128x128xf32> -> vector<128x128xf32>
    %19 = arith.addf %15, %18 : vector<128x128xf32>
    %c0_8 = arith.constant 0 : index
    %c0_9 = arith.constant 0 : index
    %20 = vector.load %arg17[%c0_8, %c0_9] : memref<128x128xf32, #tpu.memory_space<vmem>>, vector<128x128xf32>
    tpu.vector_store %arg17[%c0_8, %c0_9], %19 {strides = array<i32>} : memref<128x128xf32, #tpu.memory_space<vmem>>, vector<128x128xf32>,
    %c0_i32_10 = arith.constant 0 : i32
    %21 = arith.cmpi eq, %arg1, %c0_i32_10 : i32
    %22 = arith.extui %21 : i1 to i32
    %c0_i32_11 = arith.constant 0 : i32
    %23 = arith.cmpi ne, %22, %c0_i32_11 : i32
    scf.if %23 {
      %c0_12 = arith.constant 0 : index
      %c0_13 = arith.constant 0 : index
      %c0_14 = arith.constant 0 : index
      %24 = vector.load %arg6[%c0_12, %c0_13, %c0_14] : memref<1x128x128xbf16, #tpu.memory_space<vmem>>, vector<1x128x128xbf16>
      %25 = vector.shape_cast %24 : vector<1x128x128xbf16> to vector<128x128xbf16>
      %c0_15 = arith.constant 0 : index
      %c0_16 = arith.constant 0 : index
      %c0_17 = arith.constant 0 : index
      %26 = vector.load %arg7[%c0_15, %c0_16, %c0_17] : memref<1x1x128xf32, #tpu.memory_space<vmem>>, vector<1x1x128xf32>
      %27 = vector.shape_cast %26 : vector<1x1x128xf32> to vector<1x128xf32>
      %c0_18 = arith.constant 0 : index
      %c0_19 = arith.constant 0 : index
      %c0_20 = arith.constant 0 : index
      %28 = vector.load %arg8[%c0_18, %c0_19, %c0_20] : memref<1x128x128xbf16, #tpu.memory_space<vmem>>, vector<1x128x128xbf16>
      %29 = vector.shape_cast %28 : vector<1x128x128xbf16> to vector<128x128xbf16>
      %c0_21 = arith.constant 0 : index
      %c0_22 = arith.constant 0 : index
      %c0_23 = arith.constant 0 : index
      %30 = vector.load %arg9[%c0_21, %c0_22, %c0_23] : memref<1x1x128xf32, #tpu.memory_space<vmem>>, vector<1x1x128xf32>
      %31 = vector.shape_cast %30 : vector<1x1x128xf32> to vector<1x128xf32>
      %c0_i32_24 = arith.constant 0 : i32
      %c128_i32_25 = arith.constant 128 : i32
      %32 = arith.muli %c0_i32_24, %c128_i32_25 : i32
      %33 = tpu.assume_multiple %32, 128 : i32
      %34 = arith.index_cast %33 : i32 to index
      %c0_26 = arith.constant 0 : index
      %35 = vector.load %arg17[%34, %c0_26] : memref<128x128xf32, #tpu.memory_space<vmem>>, vector<128x128xf32>
      %36 = arith.truncf %35 : vector<128x128xf32> to vector<128x128xbf16>
      %cst_27 = arith.constant dense<0.000000e+00> : vector<128x128xf32>
      %37 = tpu.matmul %36, %25, %cst_27 {dimension_numbers = #tpu.dot_dimension_numbers<[1], [0], [0], [1], [0, 0, 1, 1], [], []>} : vector<128x128xbf16>, vector<128x128xbf16>, vector<128x128xf32> -> vector<128x128xf32>
      %38 = vector.broadcast %27 : vector<1x128xf32> to vector<128x128xf32>
      %39 = arith.addf %37, %38 : vector<128x128xf32>
      %cst_28 = arith.constant 0.000000e+00 : f32
      %40 = vector.broadcast %cst_28 : f32 to vector<128x128xf32>
      %41 = arith.maximumf %39, %40 : vector<128x128xf32>
      %42 = arith.truncf %41 : vector<128x128xf32> to vector<128x128xbf16>
      %cst_29 = arith.constant dense<0.000000e+00> : vector<128x128xf32>
      %43 = tpu.matmul %42, %29, %cst_29 {dimension_numbers = #tpu.dot_dimension_numbers<[1], [0], [0], [1], [0, 0, 1, 1], [], []>} : vector<128x128xbf16>, vector<128x128xbf16>, vector<128x128xf32> -> vector<128x128xf32>
      %44 = vector.broadcast %31 : vector<1x128xf32> to vector<128x128xf32>
      %45 = arith.addf %43, %44 : vector<128x128xf32>
      %46 = arith.index_cast %33 : i32 to index
      %c0_30 = arith.constant 0 : index
      %47 = vector.load %arg17[%46, %c0_30] : memref<128x128xf32, #tpu.memory_space<vmem>>, vector<128x128xf32>
      tpu.vector_store %arg17[%46, %c0_30], %45 {strides = array<i32>} : memref<128x128xf32, #tpu.memory_space<vmem>>, vector<128x128xf32>,
      %c1_i32 = arith.constant 1 : i32
      %c0_31 = arith.constant 0 : index
      %c0_32 = arith.constant 0 : index
      %48 = vector.load %arg17[%c0_31, %c0_32] : memref<128x128xf32, #tpu.memory_space<vmem>>, vector<128x128xf32>
      %49 = tpu.iota {dimensions = array<i32: 0>} : vector<128x128xi32>
      %c16_i32 = arith.constant 16 : i32
      %50 = vector.broadcast %c16_i32 : i32 to vector<128x128xi32>
      %51 = arith.cmpi slt, %49, %50 : vector<128x128xi32>
      %52 = arith.extui %51 : vector<128x128xi1> to vector<128x128xi32>
      %53 = arith.sitofp %52 : vector<128x128xi32> to vector<128x128xf32>
      %54 = arith.mulf %48, %53 : vector<128x128xf32>
      %cst_33 = arith.constant dense<0.000000e+00> : vector<128xf32>
      %55 = vector.multi_reduction <add>, %54, %cst_33 [0] : vector<128x128xf32> to vector<128xf32>
      %56 = vector.shape_cast %55 : vector<128xf32> to vector<1x128xf32>
      %cst_34 = arith.constant 6.250000e-02 : f32
      %57 = vector.broadcast %cst_34 : f32 to vector<1x128xf32>
      %58 = arith.mulf %56, %57 : vector<1x128xf32>
      %59 = arith.mulf %54, %54 : vector<128x128xf32>
      %cst_35 = arith.constant dense<0.000000e+00> : vector<128xf32>
      %60 = vector.multi_reduction <add>, %59, %cst_35 [0] : vector<128x128xf32> to vector<128xf32>
      %61 = vector.shape_cast %60 : vector<128xf32> to vector<1x128xf32>
      %cst_36 = arith.constant 6.250000e-02 : f32
      %62 = vector.broadcast %cst_36 : f32 to vector<1x128xf32>
      %63 = arith.mulf %61, %62 : vector<1x128xf32>
      %64 = arith.mulf %58, %58 : vector<1x128xf32>
      %65 = arith.subf %63, %64 : vector<1x128xf32>
      %cst_37 = arith.constant 0.000000e+00 : f32
      %66 = vector.broadcast %cst_37 : f32 to vector<1x128xf32>
      %67 = arith.maximumf %65, %66 : vector<1x128xf32>
      %68 = vector.broadcast %58 : vector<1x128xf32> to vector<128x128xf32>
      %69 = arith.subf %48, %68 : vector<128x128xf32>
      %cst_38 = arith.constant 9.99999974E-6 : f32
      %70 = vector.broadcast %cst_38 : f32 to vector<1x128xf32>
      %71 = arith.addf %67, %70 : vector<1x128xf32>
      %72 = math.rsqrt %71 : vector<1x128xf32>
      %73 = vector.broadcast %72 : vector<1x128xf32> to vector<128x128xf32>
      %74 = arith.mulf %69, %73 : vector<128x128xf32>
      %c0_39 = arith.constant 0 : index
      %c0_40 = arith.constant 0 : index
      %c0_41 = arith.constant 0 : index
      %75 = vector.load %arg10[%c0_39, %c0_40, %c0_41] : memref<1x1x128xf32, #tpu.memory_space<vmem>>, vector<1x1x128xf32>
      %76 = vector.shape_cast %75 : vector<1x1x128xf32> to vector<1x128xf32>
      %77 = vector.broadcast %76 : vector<1x128xf32> to vector<128x128xf32>
      %78 = arith.mulf %74, %77 : vector<128x128xf32>
      %c0_42 = arith.constant 0 : index
      %c0_43 = arith.constant 0 : index
      %c0_44 = arith.constant 0 : index
      %79 = vector.load %arg11[%c0_42, %c0_43, %c0_44] : memref<1x1x128xf32, #tpu.memory_space<vmem>>, vector<1x1x128xf32>
      %80 = vector.shape_cast %79 : vector<1x1x128xf32> to vector<1x128xf32>
      %81 = vector.broadcast %80 : vector<1x128xf32> to vector<128x128xf32>
      %82 = arith.addf %78, %81 : vector<128x128xf32>
      %c1_i32_45 = arith.constant 1 : i32
      %83 = arith.cmpi eq, %arg0, %c1_i32_45 : i32
      %cst_46 = arith.constant 0.000000e+00 : f32
      %84 = vector.broadcast %cst_46 : f32 to vector<128x128xf32>
      %85 = arith.maximumf %82, %84 : vector<128x128xf32>
      %86 = arith.select %83, %82, %85 : vector<128x128xf32>
      %87 = arith.truncf %86 : vector<128x128xf32> to vector<128x128xbf16>
      %c0_47 = arith.constant 0 : index
      %c0_48 = arith.constant 0 : index
      %88 = vector.load %arg16[%c0_47, %c0_48] : memref<128x128xbf16, #tpu.memory_space<vmem>>, vector<128x128xbf16>
      tpu.vector_store %arg16[%c0_47, %c0_48], %87 {strides = array<i32>} : memref<128x128xbf16, #tpu.memory_space<vmem>>, vector<128x128xbf16>,
      %89 = arith.extui %83 : i1 to i32
      %c0_i32_49 = arith.constant 0 : i32
      %90 = arith.cmpi ne, %89, %c0_i32_49 : i32
      scf.if %90 {
        %c0_50 = arith.constant 0 : index
        %c0_51 = arith.constant 0 : index
        %91 = vector.load %arg12[%c0_50, %c0_51] : memref<8x128xbf16, #tpu.memory_space<vmem>>, vector<8x128xbf16>
        %c0_52 = arith.constant 0 : index
        %c0_53 = arith.constant 0 : index
        %92 = vector.load %arg16[%c0_52, %c0_53] : memref<128x128xbf16, #tpu.memory_space<vmem>>, vector<128x128xbf16>
        %cst_54 = arith.constant dense<0.000000e+00> : vector<8x128xf32>
        %93 = tpu.matmul %91, %92, %cst_54 {dimension_numbers = #tpu.dot_dimension_numbers<[1], [0], [0], [1], [0, 0, 1, 1], [], []>} : vector<8x128xbf16>, vector<128x128xbf16>, vector<8x128xf32> -> vector<8x128xf32>
        %94 = arith.truncf %93 : vector<8x128xf32> to vector<8x128xbf16>
        %c0_55 = arith.constant 0 : index
        %c0_56 = arith.constant 0 : index
        %95 = vector.load %arg13[%c0_55, %c0_56] : memref<128x128xbf16, #tpu.memory_space<vmem>>, vector<128x128xbf16>
        %cst_57 = arith.constant dense<0.000000e+00> : vector<8x128xf32>
        %96 = tpu.matmul %94, %95, %cst_57 {dimension_numbers = #tpu.dot_dimension_numbers<[1], [0], [0], [1], [0, 0, 1, 1], [], []>} : vector<8x128xbf16>, vector<128x128xbf16>, vector<8x128xf32> -> vector<8x128xf32>
        %c0_58 = arith.constant 0 : index
        %c0_59 = arith.constant 0 : index
        %97 = vector.load %arg14[%c0_58, %c0_59] : memref<1x128xf32, #tpu.memory_space<vmem>>, vector<1x128xf32>
        %98 = vector.broadcast %97 : vector<1x128xf32> to vector<8x128xf32>
        %99 = arith.addf %96, %98 : vector<8x128xf32>
        %c0_60 = arith.constant 0 : index
        %c0_61 = arith.constant 0 : index
        %100 = vector.load %arg15[%c0_60, %c0_61] : memref<8x128xf32, #tpu.memory_space<vmem>>, vector<8x128xf32>
        tpu.vector_store %arg15[%c0_60, %c0_61], %99 {strides = array<i32>} : memref<8x128xf32, #tpu.memory_space<vmem>>, vector<8x128xf32>,
      } else {
      }
    } else {
    }
    return
  }
  func.func @transform_1(%arg0: i32, %arg1: i32, %arg2: memref<1xi32, #tpu.memory_space<smem>>) -> (i32, i32, i32) {
    %c0_i32 = arith.constant 0 : i32
    %c0_i32_0 = arith.constant 0 : i32
    %c0_i32_1 = arith.constant 0 : i32
    %c0_i32_2 = arith.constant 0 : i32
    return %c0_i32, %c0_i32_0, %c0_i32_1 : i32, i32, i32
  }
  func.func @transform_2(%arg0: i32, %arg1: i32, %arg2: memref<1xi32, #tpu.memory_space<smem>>) -> (i32, i32, i32) {
    %c0_i32 = arith.constant 0 : i32
    %c0_i32_0 = arith.constant 0 : i32
    %c0_i32_1 = arith.constant 0 : i32
    return %arg0, %c0_i32, %c0_i32_0 : i32, i32, i32
  }
  func.func @transform_3(%arg0: i32, %arg1: i32, %arg2: memref<1xi32, #tpu.memory_space<smem>>) -> (i32, i32, i32) {
    %c0_i32 = arith.constant 0 : i32
    %c0_i32_0 = arith.constant 0 : i32
    %c0_i32_1 = arith.constant 0 : i32
    return %arg0, %c0_i32, %c0_i32_0 : i32, i32, i32
  }
  func.func @transform_4(%arg0: i32, %arg1: i32, %arg2: memref<1xi32, #tpu.memory_space<smem>>) -> (i32, i32, i32) {
    %c0_i32 = arith.constant 0 : i32
    %c0_i32_0 = arith.constant 0 : i32
    %c0_i32_1 = arith.constant 0 : i32
    return %arg0, %c0_i32, %c0_i32_0 : i32, i32, i32
  }
  func.func @transform_5(%arg0: i32, %arg1: i32, %arg2: memref<1xi32, #tpu.memory_space<smem>>) -> (i32, i32, i32) {
    %c0_i32 = arith.constant 0 : i32
    %c0_i32_0 = arith.constant 0 : i32
    %c0_i32_1 = arith.constant 0 : i32
    return %arg0, %c0_i32, %c0_i32_0 : i32, i32, i32
  }
  func.func @transform_6(%arg0: i32, %arg1: i32, %arg2: memref<1xi32, #tpu.memory_space<smem>>) -> (i32, i32, i32) {
    %c0_i32 = arith.constant 0 : i32
    %c0_i32_0 = arith.constant 0 : i32
    %c0_i32_1 = arith.constant 0 : i32
    return %arg0, %c0_i32, %c0_i32_0 : i32, i32, i32
  }
  func.func @transform_7(%arg0: i32, %arg1: i32, %arg2: memref<1xi32, #tpu.memory_space<smem>>) -> (i32, i32, i32) {
    %c0_i32 = arith.constant 0 : i32
    %c0_i32_0 = arith.constant 0 : i32
    %c0_i32_1 = arith.constant 0 : i32
    return %arg0, %c0_i32, %c0_i32_0 : i32, i32, i32
  }
  func.func @transform_8(%arg0: i32, %arg1: i32, %arg2: memref<1xi32, #tpu.memory_space<smem>>) -> (i32, i32, i32) {
    %c0_i32 = arith.constant 0 : i32
    %c0_i32_0 = arith.constant 0 : i32
    %c0_i32_1 = arith.constant 0 : i32
    return %arg0, %c0_i32, %c0_i32_0 : i32, i32, i32
  }
  func.func @transform_9(%arg0: i32, %arg1: i32, %arg2: memref<1xi32, #tpu.memory_space<smem>>) -> (i32, i32) {
    %c0_i32 = arith.constant 0 : i32
    %c0_i32_0 = arith.constant 0 : i32
    %c0_i32_1 = arith.constant 0 : i32
    return %c0_i32, %c0_i32_0 : i32, i32
  }
  func.func @transform_10(%arg0: i32, %arg1: i32, %arg2: memref<1xi32, #tpu.memory_space<smem>>) -> (i32, i32) {
    %c0_i32 = arith.constant 0 : i32
    %c0_i32_0 = arith.constant 0 : i32
    %c0_i32_1 = arith.constant 0 : i32
    return %c0_i32, %c0_i32_0 : i32, i32
  }
  func.func @transform_11(%arg0: i32, %arg1: i32, %arg2: memref<1xi32, #tpu.memory_space<smem>>) -> (i32, i32) {
    %c0_i32 = arith.constant 0 : i32
    %c0_i32_0 = arith.constant 0 : i32
    %c0_i32_1 = arith.constant 0 : i32
    return %c0_i32, %c0_i32_0 : i32, i32
  }
  func.func @transform_12(%arg0: i32, %arg1: i32, %arg2: memref<1xi32, #tpu.memory_space<smem>>) -> (i32, i32) {
    %c0_i32 = arith.constant 0 : i32
    %c0_i32_0 = arith.constant 0 : i32
    %c0_i32_1 = arith.constant 0 : i32
    return %c0_i32, %c0_i32_0 : i32, i32
  }
}

</mosaic_0001>

<bundles_post_ra>
// kernel: tpu_custom_call.1
= control target key start
LH: loop header
LB: loop body
LE: loop exit
PB: predicated region body
PF: predicated region fallthrough
CT: control target
= control target key end

     0   :  { %s3195_s0 = inlined_call_operand.<no memory space> [shape: s32[1], index: 0, kind: input, shape index: {}]   ;;  %s3196_s1 = inlined_call_operand.hbm [shape: bf16[128,128], index: 1, kind: input, shape index: {}]   ;;  %s3197_s2 = inlined_call_operand.hbm [shape: bf16[1,128,128], index: 2, kind: input, shape index: {}]   ;;  %s3198_s3 = inlined_call_operand.hbm [shape: f32[2,128,128], index: 3, kind: input, shape index: {}]   ;;  %s3199_s4 = inlined_call_operand.hbm [shape: bf16[2,128,128], index: 4, kind: input, shape index: {}]   ;;  %s3200_s5 = inlined_call_operand.vmem [shape: f32[2,1,128], index: 5, kind: input, shape index: {}]   ;;  %s3201_s6 = inlined_call_operand.hbm [shape: bf16[2,128,128], index: 6, kind: input, shape index: {}]   ;;  %s3202_s7 = inlined_call_operand.vmem [shape: f32[2,1,128], index: 7, kind: input, shape index: {}]   ;;  %s3203_s8 = inlined_call_operand.vmem [shape: f32[2,1,128], index: 8, kind: input, shape index: {}]   ;;  %s3204_s9 = inlined_call_operand.vmem [shape: f32[2,1,128], index: 9, kind: input, shape index: {}]   ;;  %s3205_s10 = inlined_call_operand.vmem [shape: bf16[8,128], index: 10, kind: input, shape index: {}]   ;;  %s3206_s11 = inlined_call_operand.hbm [shape: bf16[128,128], index: 11, kind: input, shape index: {}]   ;;  %s3207_s12 = inlined_call_operand.vmem [shape: f32[1,128], index: 12, kind: input, shape index: {}]   ;;  %s3208_s13 = inlined_call_operand.hbm [shape: f32[8,128], index: 13, kind: output, shape index: {}]  }
   0x1   :  { %3228 = sst [smem:[#allocation30_spill]] %s3196_s1 }
   0x2   :  { %3229 = sst [smem:[#allocation31_spill]] %s3197_s2 }
   0x3   :  { %3230 = sst [smem:[#allocation32_spill]] %s3198_s3 }
   0x4   :  { %3231 = sst [smem:[#allocation33_spill]] %s3199_s4 }
   0x5   :  { %3232 = sst [smem:[#allocation34_spill]] %s3203_s8 }
   0x6   :  { %3233 = sst [smem:[#allocation35_spill]] %s3204_s9 }
   0x7   :  { %3234 = sst [smem:[#allocation36_spill]] %s3205_s10 }
   0x8   :  { %3235 = sst [smem:[#allocation37_spill]] %s3206_s11 }
   0x9   :  { %3236 = sst [smem:[#allocation38_spill]] %s3207_s12 }
   0xa   :  { %3237 = sst [smem:[#allocation39_spill]] %s3208_s13 }
   0xb   :  { %18 = sst [smem:[#allocation5]] %s3195_s0 }
   0xc   :  { %19 = vsyncpa [#allocation7], 0 }
   0xd   :  { %20 = vsyncpa [#allocation10], 0 }
   0xe   :  { %22 = vsyncpa [#allocation10 + $0x1], 0 }
   0xf   :  { %23 = vsyncpa [#allocation13], 0 }
  0x10   :  { %25 = vsyncpa [#allocation13 + $0x1], 0 }
  0x11   :  { %26 = vsyncpa [#allocation8], 0  ;;  %s2654_s27 = smov 0   ;;  %s2656_s28 = smov 0  }
  0x12   :  { %s2658_s29 = smov 0   ;;  %s2660_s30 = smov 0  }
  0x13   :  { %s2662_s14 = smov 0   ;;  %s2664_s15 = smov 0  }
  0x14 LB: > { %3238 = sst [smem:[#allocation27_spill]] %s2554_s29  ;;  %s2683_s0 = sadd.s32 4294967295, %s2566_s15   ;;  %s2566_s15 = sphi %s2664_s15, %s32_s15   ;;  %s2562_s14 = sphi %s2662_s14, %s3281_s14   ;;  %s2558_s30 = sphi %s2660_s30, %s3280_s30   ;;  %s2554_s29 = sphi %s2658_s29, %s3276_s29   ;;  %s2550_s28 = sphi %s2656_s28, %s3279_s28   ;;  %s2546_s27 = sphi %s2654_s27, %s3278_s27  }
  0x15   : > { %p85_p0 = scmp.ne.s32.totalorder %s2550_s28, %s2546_s27  ;;  %p3210_p1 = scmp.eq.s32.totalorder %s2683_s0, 0 }
  0x16   : > { %p1884_p2 = scmp.ge.s32.totalorder %s2566_s15, 1  ;;  %p336_p3 = scmp.lt.s32.totalorder %s2566_s15, 3 }
  0x17   : > { %p2691_p4 = por %p3210_p1, %p85_p0  ;;  %s2568_s18 = smov [#allocation14]  }
  0x18   : > { %p2695_p5 = pnand %p1884_p2, %p336_p3  ;;  %s364_s19 = sshll.u32 %s2568_s18, 4  ;;  %s365_s19 = int_to_ptr.vmem [resolvable:$true] %s364_s19 }
  0x19   : > { %s3239_s16 = scalar_select %p2691_p4, 1, 0 }
  0x1a   : > { %s3240_s17 = scalar_select %p2695_p5, 1, 0 }
  0x1b   : > { %p2188_p6 = pneg %p2695_p5  ;;  %s44_s21 = sadd.s32 1, %s2562_s14 }
  0x1c   : > { %s3242_s11 = sld [smem:[#allocation37_spill]] }
  0x1d   : > { %p2703_p7 = pnand %p2188_p6, %p3210_p1 }
  0x1f   : > { %s3241_s20 = scalar_select %p2703_p7, 1, 0 }
  0x20   : > { %p3220_p9 = pneg %p2703_p7 }
  0x22   : > { %s2304_s24 = scalar_lea.hbm %s3242_s11, 1024 }
  0x23   : > { %p2305_p8 = scmp.ne.s32.totalorder %s3242_s11, %s2304_s24  ;;  %p2311_p12 = scmp.lt.u32.totalorder %s2304_s24, %s3242_s11 }
  0x25   : > { %p2307_p10 = pnand %p3220_p9, %p2305_p8 }
  0x27   : > { %p2308_p11 = pneg %p2307_p10 }
  0x29   : > { %p2313_p13 = pnand %p2311_p12, %p2308_p11 }
  0x2b   : > { %2316 = shalt.err (!%p2313_p13)
}
  0x2c   : > { %s2317_s13 = scalar_lea.vmem %s365_s19, 1024  ;;  %p2325_p6 = scmp.lt.s32.totalorder %s365_s19, %s365_s19 }
  0x2d   : > { %p2318_p0 = scmp.ne.s32.totalorder %s365_s19, %s2317_s13  ;;  %p2326_p1 = scmp.lt.s32.totalorder %s2317_s13, %s2317_s13 }
  0x2f   : > { %p2320_p2 = pnand %p2318_p0, %p3220_p9  ;;  %p2327_p4 = por %p2326_p1, %p2325_p6 }
  0x31   : > { %p2321_p3 = pneg %p2320_p2 }
  0x33   : > { %p2328_p5 = pnand %p2327_p4, %p2321_p3 }
  0x35   : > { %2331 = shalt.err (!%p2328_p5)
}
  0x36   : > { %s3214_s22 = smov 64   ;;  %s3216_s23 = smov 4  }
  0x37   : > { %2194 = dma.hbm_to_vmem [thread:$0]  (!%p2703_p7), %s3242_s11, 1024, %s365_s19, [#allocation13], %s3214_s22, %s3214_s22, %s3216_s23  }
  0x38   : > { %p46_p1 = scmp.ge.s32.totalorder %s44_s21, 2  ;;  %s72_s25 = sadd.s32 1, %s2554_s29 }
  0x39   : > { %p79_p4 = scmp.ne.s32.totalorder %s2554_s29, %s2550_s28  ;;  %p80_p5 = scmp.eq.s32.totalorder %s2566_s15, 0 }
  0x3a   : > { %s3283_s21 = smov (%p46_p1, %s44_s21), 0  ;;  %p2207_p10 = scmp.lt.s32.totalorder %s2566_s15, 2 }
  0x3b   : > { %3243 = sst [smem:[#allocation28_spill]] %s3283_s21  ;;  %p81_p8 = por %p80_p5, %p79_p4 }
  0x3c   : > { %s69_s26 = ssub.s32 %s2562_s14, %s3283_s21  ;;  %s3219_s27 = sand.u32 1, %s2566_s15  }
  0x3d   : > { %p70_p11 = scmp.eq.s32.totalorder %s69_s26, 0  ;;  %s383_s18 = sand.u32 1, %s2554_s29  }
  0x3e   : > { %s1948_s12 = sshll.u32 %s2562_s14, 11  ;;  %s1888_s1 = sshll.u32 %s383_s18, 7 }
  0x3f   : > { %s2746_s10 = scalar_select %p70_p11, %s2554_s29, %s72_s25  }
  0x40   : > { %s3245_s3 = sld [smem:[#allocation32_spill]]  ;;  %p2753_p12 = pnand %p2207_p10, %p81_p8 }
  0x41   : > { %3244 = sst [smem:[#allocation29_spill]] %s2746_s10  ;;  %s385_s26 = scalar_lea.vmem [#allocation9], %s1888_s1 }
  0x42   : > { %s3246_s22 = scalar_select %p2753_p12, 1, 0 }
  0x43   : > { %s392_s23 = sshll.u32 %s385_s26, 4  ;;  %s2759_s25 = sshll.u32 %s383_s18, 6  ;;  %s2757_s23 = int_to_ptr.vmem [resolvable:$true] %s392_s23 }
  0x44   : > { %s2763_s11 = scalar_lea.sflag [#allocation10], %s3219_s27  ;;  %p2769_p0 = pneg %p2753_p12 }
  0x46   : > { %s2751_s24 = scalar_lea.hbm %s3245_s3, %s1948_s12  ;;  %s2337_s26 = scalar_lea.hbm %s3245_s3, 4096 }
  0x47   : > { %s2332_s12 = scalar_lea.hbm %s2751_s24, 2048  ;;  %p2338_p6 = scmp.lt.u32.totalorder %s2751_s24, %s3245_s3 }
  0x48   : > { %p2333_p13 = scmp.ne.s32.totalorder %s2751_s24, %s2332_s12  ;;  %p2339_p1 = scmp.lt.u32.totalorder %s2337_s26, %s2332_s12 }
  0x49   : > { %s3247_s13 = scalar_select %p2769_p0, 1, 0 }
  0x4a   : > { %p2335_p2 = pnand %p2769_p0, %p2333_p13  ;;  %p2340_p4 = por %p2339_p1, %p2338_p6 }
  0x4b   : > { %p2341_p5 = scmp.lt.u32.totalorder %s2332_s12, %s2751_s24 }
  0x4c   : > { %p2336_p3 = pneg %p2335_p2 }
  0x4d   : > { %p2342_p8 = por %p2341_p5, %p2340_p4 }
  0x4f   : > { %p2343_p10 = pnand %p2342_p8, %p2336_p3 }
  0x51   : > { %2346 = shalt.err (!%p2343_p10)
}
  0x52   : > { %s2347_s27 = scalar_lea.vmem %s2757_s23, 2048  ;;  %s2571_s1 = smov [#allocation9]  }
  0x53   : > { %p2348_p11 = scmp.ne.s32.totalorder %s2757_s23, %s2347_s27  ;;  %s2352_s19 = sshll.u32 %s2571_s1, 4  ;;  %s2353_s19 = int_to_ptr.vmem [resolvable:$false] %s2352_s19 }
  0x54   : > { %s2354_s21 = scalar_lea.vmem %s2353_s19, 4096  ;;  %p2355_p9 = scmp.lt.s32.totalorder %s2757_s23, %s2353_s19 }
  0x55   : > { %p2350_p13 = pnand %p2348_p11, %p2769_p0  ;;  %p2356_p7 = scmp.lt.s32.totalorder %s2354_s21, %s2347_s27 }
  0x57   : > { %p2351_p2 = pneg %p2350_p13  ;;  %p2357_p6 = por %p2356_p7, %p2355_p9 }
  0x59   : > { %p2358_p1 = pnand %p2357_p6, %p2351_p2 }
  0x5b   : > { %2361 = shalt.err (!%p2358_p1)
}
  0x5c   : > { %s2572_s12 = smov 128   ;;  %s2573_s26 = smov 8  }
  0x5d   : > { %2198 = dma.hbm_to_vmem [thread:$0]  (!%p2753_p12), %s2751_s24, 2048, %s2757_s23, %s2763_s11, %s2572_s12, %s2572_s12, %s2573_s26  }
  0x5e   : > { %s2574_s18 = smov [#allocation6]   ;;  %s1949_s1 = sshll.u32 %s2562_s14, 10 }
  0x5f   : > { %s348_s3 = sshll.u32 %s2574_s18, 4  ;;  %s3248_s2 = sld [smem:[#allocation31_spill]]  ;;  %s349_s3 = int_to_ptr.vmem [resolvable:$true] %s348_s3 }
  0x60   : > { %p3249_p9 = scmp.ne.s32.totalorder %s3241_s20, 0 }
  0x62   : > { %p3250_p3 = pneg %p3249_p9 }
  0x65   : > { %s2362_s27 = scalar_lea.hbm %s3248_s2, 1024 }
  0x66   : > { %p2363_p7 = scmp.ne.s32.totalorder %s3248_s2, %s2362_s27  ;;  %p2369_p8 = scmp.lt.u32.totalorder %s2362_s27, %s3248_s2 }
  0x68   : > { %p2365_p4 = pnand %p2363_p7, %p3250_p3 }
  0x6a   : > { %p2366_p5 = pneg %p2365_p4 }
  0x6c   : > { %p2371_p10 = pnand %p2369_p8, %p2366_p5 }
  0x6e   : > { %2374 = shalt.err (!%p2371_p10)
}
  0x6f   : > { %s2375_s23 = scalar_lea.vmem %s349_s3, 1024  ;;  %p3251_p13 = pmov %p3250_p3 }
  0x70   : > { %p2376_p11 = scmp.ne.s32.totalorder %s349_s3, %s2375_s23  ;;  %p2383_p1 = scmp.lt.s32.totalorder %s349_s3, %s349_s3 }
  0x71   : > { %p2384_p12 = scmp.lt.s32.totalorder %s2375_s23, %s2375_s23 }
  0x72   : > { %p2378_p2 = pnand %p2376_p11, %p3251_p13 }
  0x73   : > { %p2385_p0 = por %p2384_p12, %p2383_p1 }
  0x74   : > { %p2379_p6 = pneg %p2378_p2 }
  0x76   : > { %p2386_p3 = pnand %p2385_p0, %p2379_p6 }
  0x78   : > { %2389 = shalt.err (!%p2386_p3)
}
  0x79   : > { %s3252_s10 = smov 4   ;;  %s3253_s29 = smov 64  }
  0x7a   : > { %2191 = dma.hbm_to_vmem [thread:$0]  (!%p3249_p9), %s3248_s2, 1024, %s349_s3, [#allocation7], %s3253_s29, %s3253_s29, %s3252_s10  }
  0x7b   : > { %s3254_s4 = sld [smem:[#allocation33_spill]]  ;;  %s406_s20 = scalar_lea.vmem [#allocation11], %s2759_s25 }
  0x7c   : > { %s413_s18 = sshll.u32 %s406_s20, 4  ;;  %p3255_p0 = scmp.ne.s32.totalorder %s3247_s13, 0  ;;  %s2825_s18 = int_to_ptr.vmem [resolvable:$true] %s413_s18 }
  0x81   : > { %s2822_s26 = scalar_lea.hbm %s3254_s4, %s1949_s1  ;;  %s2395_s21 = scalar_lea.hbm %s3254_s4, 2048 }
  0x82   : > { %s2390_s19 = scalar_lea.hbm %s2822_s26, 1024  ;;  %p2396_p9 = scmp.lt.u32.totalorder %s2822_s26, %s3254_s4 }
  0x83   : > { %p2391_p12 = scmp.ne.s32.totalorder %s2822_s26, %s2390_s19  ;;  %p2397_p5 = scmp.lt.u32.totalorder %s2395_s21, %s2390_s19 }
  0x84   : > { %p2399_p10 = scmp.lt.u32.totalorder %s2390_s19, %s2822_s26 }
  0x85   : > { %p2393_p7 = pnand %p2391_p12, %p3255_p0  ;;  %p2398_p8 = por %p2397_p5, %p2396_p9 }
  0x87   : > { %p2394_p4 = pneg %p2393_p7  ;;  %p2400_p11 = por %p2399_p10, %p2398_p8 }
  0x89   : > { %p2401_p13 = pnand %p2400_p11, %p2394_p4 }
  0x8b   : > { %2404 = shalt.err (!%p2401_p13)
}
  0x8c   : > { %s2405_s9 = scalar_lea.vmem %s2825_s18, 1024  ;;  %s2575_s24 = smov [#allocation11]  }
  0x8d   : > { %p2406_p2 = scmp.ne.s32.totalorder %s2825_s18, %s2405_s9  ;;  %s2410_s12 = sshll.u32 %s2575_s24, 4  ;;  %s2411_s12 = int_to_ptr.vmem [resolvable:$false] %s2410_s12 }
  0x8e   : > { %s2412_s20 = scalar_lea.vmem %s2411_s12, 2048  ;;  %p2413_p3 = scmp.lt.s32.totalorder %s2825_s18, %s2411_s12 }
  0x8f   : > { %p2408_p6 = pnand %p2406_p2, %p3255_p0  ;;  %p2414_p12 = scmp.lt.s32.totalorder %s2412_s20, %s2405_s9 }
  0x91   : > { %p2409_p1 = pneg %p2408_p6  ;;  %p2415_p7 = por %p2414_p12, %p2413_p3 }
  0x93   : > { %p2416_p9 = pnand %p2415_p7, %p2409_p1 }
  0x95   : > { %2419 = shalt.err (!%p2416_p9)
}
  0x96   : > { %p3256_p4 = scmp.ne.s32.totalorder %s3246_s22, 0  ;;  %s2857_s27 = scalar_lea.hbm %s3201_s6, %s1949_s1 }
  0x97   : > { %s433_s21 = scalar_lea.vmem [#allocation12], %s2759_s25  ;;  %s3257_s8 = sand.u32 1, %s2566_s15  }
  0x98   : > { %2201 = dma.hbm_to_vmem [thread:$0]  (!%p3256_p4), %s2822_s26, 1024, %s2825_s18, %s2763_s11, %s3253_s29, %s3253_s29, %s3252_s10  }
  0x99   : > { %s440_s23 = sshll.u32 %s433_s21, 4  ;;  %s2864_s9 = scalar_lea.sflag [#allocation13], %s3257_s8  ;;  %s2860_s23 = int_to_ptr.vmem [resolvable:$true] %s440_s23 }
  0x9a   : > { %s2420_s24 = scalar_lea.hbm %s2857_s27, 1024  ;;  %s2425_s1 = scalar_lea.hbm %s3201_s6, 2048 }
  0x9b   : > { %p2421_p5 = scmp.ne.s32.totalorder %s2857_s27, %s2420_s24  ;;  %p2426_p11 = scmp.lt.u32.totalorder %s2857_s27, %s3201_s6 }
  0x9c   : > { %p2427_p13 = scmp.lt.u32.totalorder %s2425_s1, %s2420_s24  ;;  %p2429_p6 = scmp.lt.u32.totalorder %s2420_s24, %s2857_s27 }
  0x9d   : > { %p2423_p8 = pnand %p2421_p5, %p3255_p0 }
  0x9e   : > { %p2428_p2 = por %p2427_p13, %p2426_p11 }
  0x9f   : > { %p2424_p10 = pneg %p2423_p8 }
  0xa0   : > { %p2430_p1 = por %p2429_p6, %p2428_p2 }
  0xa2   : > { %p2431_p3 = pnand %p2430_p1, %p2424_p10 }
  0xa4   : > { %2434 = shalt.err (!%p2431_p3)
}
  0xa5   : > { %s2435_s25 = scalar_lea.vmem %s2860_s23, 1024  ;;  %s2576_s20 = smov [#allocation12]  }
  0xa6   : > { %p2436_p12 = scmp.ne.s32.totalorder %s2860_s23, %s2435_s25  ;;  %s2440_s19 = sshll.u32 %s2576_s20, 4  ;;  %s2441_s19 = int_to_ptr.vmem [resolvable:$false] %s2440_s19 }
  0xa7   : > { %s2442_s3 = scalar_lea.vmem %s2441_s19, 2048  ;;  %p2443_p5 = scmp.lt.s32.totalorder %s2860_s23, %s2441_s19 }
  0xa8   : > { %p2438_p7 = pnand %p2436_p12, %p3255_p0  ;;  %p2444_p8 = scmp.lt.s32.totalorder %s2442_s3, %s2435_s25 }
  0xaa   : > { %p2439_p9 = pneg %p2438_p7  ;;  %p2445_p11 = por %p2444_p8, %p2443_p5 }
  0xac   : > { %p2446_p13 = pnand %p2445_p11, %p2439_p9 }
  0xae   : > { %2449 = shalt.err (!%p2446_p13)
}
  0xaf   : > { %2204 = dma.hbm_to_vmem [thread:$0]  (!%p3256_p4), %s2857_s27, 1024, %s2860_s23, %s2864_s9, %s3253_s29, %s3253_s29, %s3252_s10  }
  0xb0   : > { %p3258_p0 = scmp.ne.s32.totalorder %s3240_s17, 0 }
  0xb1   : > { %p3259_p10 = scmp.eq.s32.totalorder (!%p3258_p0), %s2683_s0, 0 }
  0xb2   : > { %470 = sbr.rel (%p3258_p0) target bundleno = 1518 (0x5ee), region = 64 }
  0xb9   : > { %2523 = dma.done.wait (%p3259_p10), [#allocation7], 1024   ;;  %p3260_p2 = pmov %p3259_p10 }
  0xba   : > { %s476_s22 = sand.u32 1, %s2683_s0   ;;  %s478_s13 = sand.u32 1, %s2550_s28  }
  0xbb   : > { %2525 = vsyncadd (%p3260_p2), [#allocation7], 4294966272  ;;  %s1899_s21 = sshll.u32 %s478_s13, 7  ;;  %s477_s8 = scalar_lea.sflag [#allocation10], %s476_s22 }
  0xbc   : > { %s2899_s24 = scalar_lea.vmem [#allocation9], %s1899_s21  ;;  %p3261_p6 = scmp.ne.s32.totalorder %s3239_s16, 0 }
  0xbe   : > { %2527 = dma.done.wait (%p3261_p6), %s477_s8, 3072  }
  0xbf   : > { %2529 = vsyncadd (%p3261_p6), %s477_s8, 4294964224  ;;  %s1900_s17 = sshll.u32 %s478_s13, 6  ;;  %s495_s29 = scalar_lea.sflag [#allocation13], %s476_s22 }
  0xc0   : > { %s2905_s10 = scalar_lea.vmem [#allocation11], %s1900_s17  ;;  %s2907_s27 = scalar_lea.vmem [#allocation12], %s1900_s17 }
  0xc1   : > { %2531 = dma.done.wait (%p3261_p6), %s495_s29, 1024  }
  0xc2   : > { %2533 = vsyncadd (%p3261_p6), %s495_s29, 4294966272  ;;  %p3262_p4 = pmov %p3260_p2 }
  0xc3   : > { %p3263_p1 = pmov %p3260_p2 }
  0xc4   : > { %2535 = dma.done.wait (%p3262_p4), [#allocation13], 1024  }
  0xc5   : > { %2537 = vsyncadd (%p3263_p1), [#allocation13], 4294966272  ;;  %p558_p3 = scmp.lt.s32.totalorder %s2558_s30, 1  ;;  %p571_p12 = scmp.eq.s32.totalorder %s2558_s30, 0 }
  0xc6   : > { %s3264_s20 = sld [smem:[#allocation34_spill]]  ;;  %s3265_s13 = sld [smem:[#allocation35_spill]] }
  0xc7   : > { %s2920_s23 = scalar_select %p558_p3, %s2558_s30, 1 }
  0xc8   : > { %576 = sbr.rel (!%p571_p12) target bundleno = 230 (0xe6), region = 88 }
  0xc9   : > { %s563_s18 = scalar_lea.vmem %s3202_s7, %s2920_s23 }
  0xcc   : > { %s566_s19 = scalar_lea.vmem %s3264_s20, %s2920_s23  ;;  %s569_s21 = scalar_lea.vmem %s3265_s13, %s2920_s23 }
  0xcf   : > { %s2577_s8 = smov [#allocation2]   ;;  %s3266_s11 = sld [smem:[#allocation30_spill]] }
  0xd0   : > { %s584_s17 = sshll.u32 %s2577_s8, 4  ;;  %s585_s17 = int_to_ptr.vmem [resolvable:$true] %s584_s17 }
  0xd5   : > { %s2450_s16 = scalar_lea.hbm %s3266_s11, 1024 }
  0xd6   : > { %p2451_p7 = scmp.ne.s32.totalorder %s3266_s11, %s2450_s16  ;;  %p2454_p9 = scmp.lt.u32.totalorder %s2450_s16, %s3266_s11 }
  0xd8   : > { %p2456_p5 = pnand %p2454_p9, %p2451_p7 }
  0xda   : > { %2459 = shalt.err (!%p2456_p5)  }
  0xdb   : > { %s2460_s12 = scalar_lea.vmem %s585_s17, 1024  ;;  %p2465_p11 = scmp.lt.s32.totalorder %s585_s17, %s585_s17 }
  0xdc   : > { %p2461_p8 = scmp.ne.s32.totalorder %s585_s17, %s2460_s12  ;;  %p2466_p13 = scmp.lt.s32.totalorder %s2460_s12, %s2460_s12 }
  0xde   : > { %p2467_p0 = por %p2466_p13, %p2465_p11 }
  0xe0   : > { %p2468_p10 = pnand %p2467_p0, %p2461_p8 }
  0xe2   : > { %2471 = shalt.err (!%p2468_p10)  }
  0xe3   : > { %587 = dma.hbm_to_vmem [thread:$0]  %s3266_s11, 1024, %s585_s17, [#allocation16] }
  0xe4   : > { %2538 = dma.done.wait [#allocation16], 1024 }
  0xe5   : > { %2539 = vsyncadd [#allocation16], 4294966272 }
  0xe6 PF: > { %s646_s2 = sld [smem:[#allocation5]]  ;;  %v2270_v0 = vld [vmem:[#allocation6] sm:$0xff]   ;;  %v2279_v4 = vld [vmem:[%s2905_s10 + $0x8] sm:$0xff]   ;;  %v2280_v5 = vld [vmem:[%s2905_s10 + $0x10] sm:$0xff]   ;;  %s3267_s13 = scalar_lea.vmem %s3200_s5, %s2920_s23 }
  0xe7   : > { %2034 = vmatprep.mubr.bf16.mxu0 %v2270_v0  ;;  %v2278_v1 = vld [vmem:[%s2905_s10] sm:$0xff]   ;;  %v2281_v8 = vld [vmem:[%s2905_s10 + $0x18] sm:$0xff]   ;;  %v2283_v11 = vld [vmem:[%s2905_s10 + $0x28] sm:$0xff]   ;;  %p1496_p2 = scmp.eq.s32.totalorder %s2558_s30, 1  ;;  %p1934_p6 = scmp.ne.s32.totalorder %s2558_s30, 1 }
  0xe8   : > { %2050 = vmatprep.subr.bf16.mxu1 %v2278_v1  ;;  %v2282_v9 = vld [vmem:[%s2905_s10 + $0x20] sm:$0xff]   ;;  %v2271_v15 = vld [vmem:[#allocation6 + $0x8] sm:$0xff]   ;;  %v2272_v16 = vld [vmem:[#allocation6 + $0x10] sm:$0xff]   ;;  %vm2579_vm1 = vmmov (!%p1934_p6), 0   ;;  %s3273_s20 = sld [smem:[#allocation38_spill]] (!%p1934_p6) }
  0xe9   : > { %2051 = vmatpush3.bf16.msra.mxu1 %v2278_v1  ;;  %v2273_v17 = vld [vmem:[#allocation6 + $0x18] sm:$0xff]   ;;  %v2274_v18 = vld [vmem:[#allocation6 + $0x20] sm:$0xff]   ;;  %v2275_v19 = vld [vmem:[#allocation6 + $0x28] sm:$0xff]  }
  0xea   : > { %2052 = vmatprep.subr.bf16.mxu1 %v2279_v4  ;;  %v2276_v20 = vld [vmem:[#allocation6 + $0x30] sm:$0xff]   ;;  %v2277_v21 = vld [vmem:[#allocation6 + $0x38] sm:$0xff]   ;;  %v2286_v24 = vld [vmem:[%s2907_s27] sm:$0xff]  }
  0xeb   : > { %v2284_v22 = vld [vmem:[%s2905_s10 + $0x30] sm:$0xff]   ;;  %v2285_v23 = vld [vmem:[%s2905_s10 + $0x38] sm:$0xff]   ;;  %v2287_v25 = vld [vmem:[%s2907_s27 + $0x8] sm:$0xff]  }
  0xec   : > { %s1904_s4 = sshll.u32 %s646_s2, 7  ;;  %v2288_v26 = vld [vmem:[%s2907_s27 + $0x10] sm:$0xff]   ;;  %v2289_v27 = vld [vmem:[%s2907_s27 + $0x18] sm:$0xff]   ;;  %v2973_v28 = vld [vmem:[%s2907_s27 + $0x20] sm:$0xff]  }
  0xed   : > { %s664_s16 = sshra.s32 %s1904_s4, 4  ;;  %2053 = vmatpush3.bf16.msra.mxu1 %v2279_v4  ;;  %v2977_v29 = vld [vmem:[%s2907_s27 + $0x28] sm:$0xff]   ;;  %v597_v30 = vld [vmem:[%s2899_s24 + $0x10] sm:$0xff]  ;;  %v598_v32 = vld [vmem:[%s2899_s24 + $0x18] sm:$0xff] }
  0xee   : > { %s1905_s3 = sshll.u32 %s664_s16, 3  ;;  %2054 = vmatprep.subr.bf16.mxu1 %v2280_v5  ;;  %v595_v33 = vld [vmem:[%s2899_s24] sm:$0xff]  ;;  %v596_v35 = vld [vmem:[%s2899_s24 + $0x8] sm:$0xff]  ;;  %v601_v44 = vld [vmem:[%s2899_s24 + $0x30] sm:$0xff] }
  0xef   : > { %s2951_s22 = scalar_lea.vmem [#allocation2], %s1905_s3  ;;  %v602_v46 = vld [vmem:[%s2899_s24 + $0x38] sm:$0xff]  ;;  %v599_v47 = vld [vmem:[%s2899_s24 + $0x20] sm:$0xff]  ;;  %v600_v49 = vld [vmem:[%s2899_s24 + $0x28] sm:$0xff] }
  0xf0   : > { %v668_v2 = vld [vmem:[%s2951_s22] sm:$0xff]  ;;  %v669_v3 = vld [vmem:[%s2951_s22 + $0x8] sm:$0xff]  ;;  %v670_v6 = vld [vmem:[%s2951_s22 + $0x10] sm:$0xff] }
  0xf1   : > { %2018 = vmatprep.subr.bf16.mxu0 %v668_v2  ;;  %v671_v7 = vld [vmem:[%s2951_s22 + $0x18] sm:$0xff]  ;;  %v672_v10 = vld [vmem:[%s2951_s22 + $0x20] sm:$0xff]  ;;  %2055 = vmatpush3.bf16.msra.mxu1 %v2280_v5  ;;  %v673_v12 = vld [vmem:[%s2951_s22 + $0x28] sm:$0xff] }
  0xf2   : > { %2019 = vmatpush3.bf16.msra.mxu0 %v668_v2  ;;  %2056 = vmatprep.subr.bf16.mxu1 %v2281_v8  ;;  %v674_v13 = vld [vmem:[%s2951_s22 + $0x30] sm:$0xff]  ;;  %v675_v14 = vld [vmem:[%s2951_s22 + $0x38] sm:$0xff]  ;;  %v603_v61 = vld [vmem:[%s2899_s24 + $0x40] sm:$0xff] }
  0xf3   : > { %2020 = vmatprep.subr.bf16.mxu0 %v669_v3  ;;  %v605_v58 = vld [vmem:[%s2899_s24 + $0x50] sm:$0xff]  ;;  %v606_v60 = vld [vmem:[%s2899_s24 + $0x58] sm:$0xff]  ;;  %v604_v63 = vld [vmem:[%s2899_s24 + $0x48] sm:$0xff] }
  0xf5   : > { %2057 = vmatpush3.bf16.msra.mxu1 %v2281_v8  ;;  %v609_v8 = vld [vmem:[%s2899_s24 + $0x70] sm:$0xff] }
  0xf6   : > { %2021 = vmatpush3.bf16.msra.mxu0 %v669_v3  ;;  %2058 = vmatprep.subr.bf16.mxu1 %v2282_v9 }
  0xf7   : > { %2022 = vmatprep.subr.bf16.mxu0 %v670_v6 }
  0xf9   : > { %2059 = vmatpush3.bf16.msra.mxu1 %v2282_v9 }
  0xfa   : > { %2023 = vmatpush3.bf16.msra.mxu0 %v670_v6  ;;  %2060 = vmatprep.subr.bf16.mxu1 %v2283_v11 }
  0xfb   : > { %2024 = vmatprep.subr.bf16.mxu0 %v671_v7 }
  0xfd   : > { %2061 = vmatpush3.bf16.msra.mxu1 %v2283_v11  ;;  %v607_v11 = vld [vmem:[%s2899_s24 + $0x60] sm:$0xff] }
  0xfe   : > { %2025 = vmatpush3.bf16.msra.mxu0 %v671_v7  ;;  %2062 = vmatprep.subr.bf16.mxu1 %v2284_v22 }
  0xff   : > { %2026 = vmatprep.subr.bf16.mxu0 %v672_v10 }
 0x101   : > { %2063 = vmatpush3.bf16.msra.mxu1 %v2284_v22  ;;  %v2292_v22 = vld [vmem:[%s2907_s27 + $0x30] sm:$0xff]  }
 0x102   : > { %2027 = vmatpush3.bf16.msra.mxu0 %v672_v10  ;;  %2064 = vmatprep.subr.bf16.mxu1 %v2285_v23  ;;  %v610_v10 = vld [vmem:[%s2899_s24 + $0x78] sm:$0xff] }
 0x103   : > { %2028 = vmatprep.subr.bf16.mxu0 %v673_v12 }
 0x105   : > { %2065 = vmatpush3.bf16.msra.mxu1 %v2285_v23  ;;  %v2293_v23 = vld [vmem:[%s2907_s27 + $0x38] sm:$0xff]  }
 0x106   : > { %2029 = vmatpush3.bf16.msra.mxu0 %v673_v12  ;;  %2154 = vmatprep.subr.bf16.mxu1 %v2286_v24 }
 0x107   : > { %2030 = vmatprep.subr.bf16.mxu0 %v674_v13 }
 0x10a   : > { %2031 = vmatpush3.bf16.msra.mxu0 %v674_v13  ;;  %v608_v13 = vld [vmem:[%s2899_s24 + $0x68] sm:$0xff] }
 0x10b   : > { %2032 = vmatprep.subr.bf16.mxu0 %v675_v14 }
 0x10e   : > { %2033 = vmatpush3.bf16.msra.mxu0 %v675_v14 }
 0x10f   : > { %2082 = vmatprep.subr.bf16.mxu0 %v2286_v24 }
 0x111   : > { %2035 = vmatmul.mubr.bf16.vlgmr.msra.gmra.mrb[0].mxu0 %v2271_v15 }
 0x112   : > { %2038 = vmatprep.mubr.bf16.mxu0 %v2272_v16  ;;  %2083 = vmatpush3.bf16.msra.mxu0 %v2286_v24 }
 0x113   : > { %2084 = vmatprep.subr.bf16.mxu0 %v2287_v25 }
 0x116   : > { %2085 = vmatpush3.bf16.msra.mxu0 %v2287_v25 }
 0x117   : > { %2086 = vmatprep.subr.bf16.mxu0 %v2288_v26 }
 0x119   : > { %2039 = vmatmul.mubr.bf16.gmra.mrb[4].mxu0 %v2273_v17 }
 0x11a   : > { %2042 = vmatprep.mubr.bf16.mxu0 %v2274_v18  ;;  %2087 = vmatpush3.bf16.msra.mxu0 %v2288_v26 }
 0x11b   : > { %2088 = vmatprep.subr.bf16.mxu0 %v2289_v27 }
 0x11e   : > { %2089 = vmatpush3.bf16.msra.mxu0 %v2289_v27 }
 0x11f   : > { %2090 = vmatprep.subr.bf16.mxu0 %v2973_v28 }
 0x121   : > { %2043 = vmatmul.mubr.bf16.gmra.mrb[8].mxu0 %v2275_v19 }
 0x122   : > { %2046 = vmatprep.mubr.bf16.mxu0 %v2276_v20  ;;  %2091 = vmatpush3.bf16.msra.mxu0 %v2973_v28 }
 0x123   : > { %2092 = vmatprep.subr.bf16.mxu0 %v2977_v29 }
 0x126   : > { %2093 = vmatpush3.bf16.msra.mxu0 %v2977_v29 }
 0x127   : > { %2094 = vmatprep.subr.bf16.mxu0 %v2292_v22 }
 0x129   : > { %2047 = vmatmul.mubr.bf16.gmra.mrb[12].mxu0 %v2277_v21 }
 0x12a   : > { %2095 = vmatpush3.bf16.msra.mxu0 %v2292_v22 }
 0x12b   : > { %2096 = vmatprep.subr.bf16.mxu0 %v2293_v23 }
 0x12e   : > { %2097 = vmatpush3.bf16.msra.mxu0 %v2293_v23 }
 0x1e4   : > { %v2036_v31 = vpop.f32.mrb[0].mxu0 }
 0x1e5   : > { %v758_v34 = vpop.f32.mrb[1].mxu0  ;;  %v823_v37 = vadd.f32 %v2036_v31, %v597_v30 }
 0x1e6   : > { %v2037_v36 = vpop.f32.mrb[2].mxu0  ;;  %v821_v40 = vadd.f32 %v758_v34, %v595_v33 }
 0x1e7   : > { %v824_v38 = vadd.f32 %v2037_v36, %v598_v32  ;;  %v761_v39 = vpop.f32.mrb[3].mxu0 }
 0x1e8   : > { %v822_v41 = vadd.f32 %v761_v39, %v596_v35 }
 0x1e9   : > { %v907_v42 = vpack.c.bf16 %v824_v38, %v823_v37 }
 0x1ea   : > { %v906_v43 = vpack.c.bf16 %v822_v41, %v821_v40 }
 0x1ec   : > { %v2040_v45 = vpop.f32.mrb[4].mxu0  ;;  %2066 = vmatprep.mubr.bf16.mxu1 %v906_v43 }
 0x1ed   : > { %v774_v48 = vpop.f32.mrb[5].mxu0  ;;  %2067 = vmatmul.mubr.bf16.vlgmr.msra.gmra.mrb[0].mxu1 %v907_v42  ;;  %v827_v51 = vadd.f32 %v2040_v45, %v601_v44 }
 0x1ee   : > { %v2041_v50 = vpop.f32.mrb[6].mxu0  ;;  %2162 = vmatpush3.bf16.msra.mxu1 %v2286_v24  ;;  %v825_v54 = vadd.f32 %v774_v48, %v599_v47  ;;  %v1914_v24 = vld [vmem:[%s3267_s13] ss:$0 sm:$0xff] }
 0x1ef   : > { %v828_v52 = vadd.f32 %v2041_v50, %v602_v46  ;;  %v777_v53 = vpop.f32.mrb[7].mxu0  ;;  %2155 = vmatprep.subr.bf16.mxu1 %v2287_v25 }
 0x1f0   : > { %v826_v55 = vadd.f32 %v777_v53, %v600_v49 }
 0x1f1   : > { %v909_v56 = vpack.c.bf16 %v828_v52, %v827_v51 }
 0x1f2   : > { %v908_v57 = vpack.c.bf16 %v826_v55, %v825_v54  ;;  %2163 = vmatpush3.bf16.msra.mxu1 %v2287_v25 }
 0x1f3   : > { %2156 = vmatprep.subr.bf16.mxu1 %v2288_v26 }
 0x1f4   : > { %v2044_v59 = vpop.f32.mrb[8].mxu0  ;;  %2070 = vmatprep.mubr.bf16.mxu1 %v908_v57 }
 0x1f5   : > { %v790_v62 = vpop.f32.mrb[9].mxu0  ;;  %2071 = vmatmul.mubr.bf16.gmra.mrb[4].mxu1 %v909_v56  ;;  %v831_v1 = vadd.f32 %v2044_v59, %v605_v58 }
 0x1f6   : > { %v2045_v0 = vpop.f32.mrb[10].mxu0  ;;  %2164 = vmatpush3.bf16.msra.mxu1 %v2288_v26  ;;  %v829_v4 = vadd.f32 %v790_v62, %v603_v61 }
 0x1f7   : > { %v832_v2 = vadd.f32 %v2045_v0, %v606_v60  ;;  %v793_v3 = vpop.f32.mrb[11].mxu0  ;;  %2157 = vmatprep.subr.bf16.mxu1 %v2289_v27 }
 0x1f8   : > { %v830_v5 = vadd.f32 %v793_v3, %v604_v63 }
 0x1f9   : > { %v911_v6 = vpack.c.bf16 %v832_v2, %v831_v1 }
 0x1fa   : > { %v910_v7 = vpack.c.bf16 %v830_v5, %v829_v4  ;;  %2165 = vmatpush3.bf16.msra.mxu1 %v2289_v27 }
 0x1fb   : > { %2158 = vmatprep.subr.bf16.mxu1 %v2973_v28 }
 0x1fc   : > { %v2048_v9 = vpop.f32.mrb[12].mxu0  ;;  %2074 = vmatprep.mubr.bf16.mxu1 %v910_v7 }
 0x1fd   : > { %v806_v12 = vpop.f32.mrb[13].mxu0  ;;  %2075 = vmatmul.mubr.bf16.gmra.mrb[8].mxu1 %v911_v6  ;;  %v835_v15 = vadd.f32 %v2048_v9, %v609_v8 }
 0x1fe   : > { %v2049_v14 = vpop.f32.mrb[14].mxu0  ;;  %2166 = vmatpush3.bf16.msra.mxu1 %v2973_v28  ;;  %v833_v18 = vadd.f32 %v806_v12, %v607_v11 }
 0x1ff   : > { %v836_v16 = vadd.f32 %v2049_v14, %v610_v10  ;;  %v809_v17 = vpop.f32.mrb[15].mxu0  ;;  %2159 = vmatprep.subr.bf16.mxu1 %v2977_v29 }
 0x200   : > { %v834_v19 = vadd.f32 %v809_v17, %v608_v13  ;;  %v3014_v17 = vld [vmem:[%s563_s18] ss:$0 sm:$0xff]  ;;  %s1513_s18 = scalar_select %p1496_p2, 1, 0 }
 0x201   : > { %v913_v20 = vpack.c.bf16 %v836_v16, %v835_v15 }
 0x202   : > { %v912_v21 = vpack.c.bf16 %v834_v19, %v833_v18  ;;  %2167 = vmatpush3.bf16.msra.mxu1 %v2977_v29 }
 0x203   : > { %2160 = vmatprep.subr.bf16.mxu1 %v2292_v22 }
 0x204   : > { %2078 = vmatprep.mubr.bf16.mxu1 %v912_v21 }
 0x205   : > { %2079 = vmatmul.mubr.bf16.gmra.mrb[12].mxu1 %v913_v20 }
 0x206   : > { %2168 = vmatpush3.bf16.msra.mxu1 %v2292_v22 }
 0x207   : > { %2161 = vmatprep.subr.bf16.mxu1 %v2293_v23 }
 0x20a   : > { %2169 = vmatpush3.bf16.msra.mxu1 %v2293_v23 }
 0x2c0   : > { %v2068_v25 = vpop.f32.mrb[0].mxu1 }
 0x2c1   : > { %v1011_v26 = vadd.f32 %v2068_v25, %v1914_v24  ;;  %v1002_v27 = vpop.f32.mrb[1].mxu1 }
 0x2c2   : > { %v1003_v28 = vadd.f32 %v1914_v24, %v1002_v27  ;;  %v2069_v29 = vpop.f32.mrb[2].mxu1 }
 0x2c3   : > { %v1014_v30 = vadd.f32 %v2069_v29, %v1914_v24  ;;  %v1005_v31 = vpop.f32.mrb[3].mxu1  ;;  %v1067_v33 = vmax.f32 %v1011_v26, 0.0 }
 0x2c4   : > { %v1006_v32 = vadd.f32 %v1914_v24, %v1005_v31  ;;  %v1065_v35 = vmax.f32 %v1003_v28, 0.0 }
 0x2c5   : > { %v1068_v34 = vmax.f32 %v1014_v30, 0.0 }
 0x2c6   : > { %v1066_v36 = vmax.f32 %v1006_v32, 0.0 }
 0x2c7   : > { %v1082_v37 = vpack.c.bf16 %v1068_v34, %v1067_v33 }
 0x2c8   : > { %v1081_v38 = vpack.c.bf16 %v1066_v36, %v1065_v35  ;;  %v2072_v39 = vpop.f32.mrb[4].mxu1 }
 0x2c9   : > { %v1027_v40 = vadd.f32 %v2072_v39, %v1914_v24  ;;  %v1018_v41 = vpop.f32.mrb[5].mxu1 }
 0x2ca   : > { %v1019_v42 = vadd.f32 %v1914_v24, %v1018_v41  ;;  %v2073_v43 = vpop.f32.mrb[6].mxu1  ;;  %2098 = vmatprep.mubr.bf16.mxu0 %v1081_v38 }
 0x2cb   : > { %v1030_v44 = vadd.f32 %v2073_v43, %v1914_v24  ;;  %v1021_v45 = vpop.f32.mrb[7].mxu1  ;;  %2099 = vmatmul.mubr.bf16.vlgmr.msra.gmra.mrb[16].mxu0 %v1082_v37  ;;  %v1071_v47 = vmax.f32 %v1027_v40, 0.0 }
 0x2cc   : > { %v1022_v46 = vadd.f32 %v1914_v24, %v1021_v45  ;;  %v1069_v49 = vmax.f32 %v1019_v42, 0.0 }
 0x2cd   : > { %v1072_v48 = vmax.f32 %v1030_v44, 0.0 }
 0x2ce   : > { %v1070_v50 = vmax.f32 %v1022_v46, 0.0 }
 0x2cf   : > { %v1084_v51 = vpack.c.bf16 %v1072_v48, %v1071_v47 }
 0x2d0   : > { %v1083_v52 = vpack.c.bf16 %v1070_v50, %v1069_v49  ;;  %v2076_v53 = vpop.f32.mrb[8].mxu1 }
 0x2d1   : > { %v1043_v54 = vadd.f32 %v2076_v53, %v1914_v24  ;;  %v1034_v55 = vpop.f32.mrb[9].mxu1 }
 0x2d2   : > { %v1035_v56 = vadd.f32 %v1914_v24, %v1034_v55  ;;  %v2077_v57 = vpop.f32.mrb[10].mxu1  ;;  %2102 = vmatprep.mubr.bf16.mxu0 %v1083_v52 }
 0x2d3   : > { %v1046_v58 = vadd.f32 %v2077_v57, %v1914_v24  ;;  %v1037_v59 = vpop.f32.mrb[11].mxu1  ;;  %2103 = vmatmul.mubr.bf16.gmra.mrb[20].mxu0 %v1084_v51  ;;  %v1075_v61 = vmax.f32 %v1043_v54, 0.0 }
 0x2d4   : > { %v1038_v60 = vadd.f32 %v1914_v24, %v1037_v59  ;;  %v1073_v63 = vmax.f32 %v1035_v56, 0.0 }
 0x2d5   : > { %v1076_v62 = vmax.f32 %v1046_v58, 0.0 }
 0x2d6   : > { %v1074_v0 = vmax.f32 %v1038_v60, 0.0 }
 0x2d7   : > { %v1086_v1 = vpack.c.bf16 %v1076_v62, %v1075_v61 }
 0x2d8   : > { %v1085_v2 = vpack.c.bf16 %v1074_v0, %v1073_v63  ;;  %v2080_v3 = vpop.f32.mrb[12].mxu1 }
 0x2d9   : > { %v1059_v4 = vadd.f32 %v2080_v3, %v1914_v24  ;;  %v1050_v5 = vpop.f32.mrb[13].mxu1 }
 0x2da   : > { %v1051_v6 = vadd.f32 %v1914_v24, %v1050_v5  ;;  %v2081_v7 = vpop.f32.mrb[14].mxu1  ;;  %2106 = vmatprep.mubr.bf16.mxu1 %v1085_v2 }
 0x2db   : > { %v1062_v8 = vadd.f32 %v2081_v7, %v1914_v24  ;;  %v1053_v9 = vpop.f32.mrb[15].mxu1  ;;  %2107 = vmatmul.mubr.bf16.vlgmr.msra.gmra.mrb[16].mxu1 %v1086_v1  ;;  %v1079_v11 = vmax.f32 %v1059_v4, 0.0 }
 0x2dc   : > { %v1054_v10 = vadd.f32 %v1914_v24, %v1053_v9  ;;  %v1077_v13 = vmax.f32 %v1051_v6, 0.0 }
 0x2dd   : > { %v1080_v12 = vmax.f32 %v1062_v8, 0.0 }
 0x2de   : > { %v1078_v14 = vmax.f32 %v1054_v10, 0.0 }
 0x2df   : > { %v1088_v15 = vpack.c.bf16 %v1080_v12, %v1079_v11 }
 0x2e0   : > { %v1087_v16 = vpack.c.bf16 %v1078_v14, %v1077_v13 }
 0x2e2   : > { %2110 = vmatprep.mubr.bf16.mxu1 %v1087_v16 }
 0x2e3   : > { %2111 = vmatmul.mubr.bf16.gmra.mrb[20].mxu1 %v1088_v15 }
 0x39e   : > { %v2100_v18 = vpop.f32.mrb[16].mxu0 }
 0x39f   : > { %v3017_v19 = vadd.f32 %v2100_v18, %v3014_v17  ;;  %v1177_v20 = vpop.f32.mrb[17].mxu0 }
 0x3a0   : > { %v3020_v21 = vadd.f32 %v3014_v17, %v1177_v20  ;;  %v2101_v22 = vpop.f32.mrb[18].mxu0 }
 0x3a1   : > { %v3023_v23 = vadd.f32 %v2101_v22, %v3014_v17  ;;  %v1180_v24 = vpop.f32.mrb[19].mxu0  ;;  %v1339_v25 = vmul.f32 0.0, %v3017_v19 }
 0x3a2   : > { %v3027_v26 = vadd.f32 %v3014_v17, %v1180_v24  ;;  %v1375_v28 = vmul.f32 %v3020_v21, %v3020_v21 }
 0x3a3   : > { %v1340_v27 = vmul.f32 0.0, %v3023_v23  ;;  %v1377_v31 = vmul.f32 %v1339_v25, %v1339_v25 }
 0x3a4   : > { %v1353_v29 = vadd.f32 %v3027_v26, %v3020_v21  ;;  %v1376_v30 = vmul.f32 %v3027_v26, %v3027_v26 }
 0x3a5   : > { %v1378_v35 = vmul.f32 %v1340_v27, %v1340_v27 }
 0x3a6   : > { %v1354_v32 = vadd.f32 %v1353_v29, %v1339_v25  ;;  %v1391_v33 = vadd.f32 %v1376_v30, %v1375_v28  ;;  %v2104_v34 = vpop.f32.mrb[20].mxu0 }
 0x3a7   : > { %v1193_v36 = vpop.f32.mrb[21].mxu0  ;;  %v3037_v38 = vadd.f32 %v2104_v34, %v3014_v17 }
 0x3a8   : > { %v1392_v37 = vadd.f32 %v1391_v33, %v1377_v31  ;;  %v3040_v39 = vadd.f32 %v3014_v17, %v1193_v36  ;;  %v1355_v40 = vadd.f32 %v1354_v32, %v1340_v27  ;;  %v2105_v41 = vpop.f32.mrb[22].mxu0 }
 0x3a9   : > { %v3043_v42 = vadd.f32 %v2105_v41, %v3014_v17  ;;  %v1196_v43 = vpop.f32.mrb[23].mxu0  ;;  %v1343_v47 = vmul.f32 0.0, %v3037_v38 }
 0x3aa   : > { %v1341_v44 = vmul.f32 0.0, %v3040_v39  ;;  %v1393_v45 = vadd.f32 %v1392_v37, %v1378_v35  ;;  %v3047_v46 = vadd.f32 %v3014_v17, %v1196_v43 }
 0x3ab   : > { %v1344_v51 = vmul.f32 0.0, %v3043_v42  ;;  %v1381_v58 = vmul.f32 %v1343_v47, %v1343_v47 }
 0x3ac   : > { %v1356_v48 = vadd.f32 %v1355_v40, %v1341_v44  ;;  %v1379_v49 = vmul.f32 %v1341_v44, %v1341_v44  ;;  %v1342_v50 = vmul.f32 0.0, %v3047_v46 }
 0x3ad   : > { %v1382_v63 = vmul.f32 %v1344_v51, %v1344_v51 }
 0x3ae   : > { %v1394_v52 = vadd.f32 %v1393_v45, %v1379_v49  ;;  %v1357_v53 = vadd.f32 %v1356_v48, %v1342_v50  ;;  %v1380_v54 = vmul.f32 %v1342_v50, %v1342_v50  ;;  %v2108_v55 = vpop.f32.mrb[16].mxu1 }
 0x3af   : > { %v3053_v56 = vadd.f32 %v2108_v55, %v3014_v17  ;;  %v1209_v57 = vpop.f32.mrb[17].mxu1 }
 0x3b0   : > { %v1358_v59 = vadd.f32 %v1357_v53, %v1343_v47  ;;  %v1395_v60 = vadd.f32 %v1394_v52, %v1380_v54  ;;  %v3056_v61 = vadd.f32 %v3014_v17, %v1209_v57  ;;  %v2109_v62 = vpop.f32.mrb[18].mxu1 }
 0x3b1   : > { %v3059_v0 = vadd.f32 %v2109_v62, %v3014_v17  ;;  %v1212_v1 = vpop.f32.mrb[19].mxu1  ;;  %v1347_v6 = vmul.f32 0.0, %v3053_v56 }
 0x3b2   : > { %v1396_v2 = vadd.f32 %v1395_v60, %v1381_v58  ;;  %v1345_v3 = vmul.f32 0.0, %v3056_v61  ;;  %v1359_v4 = vadd.f32 %v1358_v59, %v1344_v51  ;;  %v3063_v5 = vadd.f32 %v3014_v17, %v1212_v1 }
 0x3b3   : > { %v1348_v11 = vmul.f32 0.0, %v3059_v0  ;;  %v1385_v20 = vmul.f32 %v1347_v6, %v1347_v6 }
 0x3b4   : > { %v1360_v7 = vadd.f32 %v1359_v4, %v1345_v3  ;;  %v1383_v8 = vmul.f32 %v1345_v3, %v1345_v3  ;;  %v1397_v9 = vadd.f32 %v1396_v2, %v1382_v63  ;;  %v1346_v10 = vmul.f32 0.0, %v3063_v5 }
 0x3b5   : > { %v1386_v28 = vmul.f32 %v1348_v11, %v1348_v11 }
 0x3b6   : > { %v1398_v12 = vadd.f32 %v1397_v9, %v1383_v8  ;;  %v1361_v13 = vadd.f32 %v1360_v7, %v1346_v10  ;;  %v1384_v14 = vmul.f32 %v1346_v10, %v1346_v10  ;;  %v2112_v15 = vpop.f32.mrb[20].mxu1 }
 0x3b7   : > { %v3069_v16 = vadd.f32 %v2112_v15, %v3014_v17  ;;  %v1225_v18 = vpop.f32.mrb[21].mxu1 }
 0x3b8   : > { %v1362_v22 = vadd.f32 %v1361_v13, %v1347_v6  ;;  %v1399_v24 = vadd.f32 %v1398_v12, %v1384_v14  ;;  %v3072_v25 = vadd.f32 %v3014_v17, %v1225_v18  ;;  %v2113_v27 = vpop.f32.mrb[22].mxu1 }
 0x3b9   : > { %v3075_v29 = vadd.f32 %v2113_v27, %v3014_v17  ;;  %v1228_v30 = vpop.f32.mrb[23].mxu1  ;;  %v1351_v35 = vmul.f32 0.0, %v3069_v16 }
 0x3ba   : > { %v1400_v31 = vadd.f32 %v1399_v24, %v1385_v20  ;;  %v1349_v32 = vmul.f32 0.0, %v3072_v25  ;;  %v1363_v33 = vadd.f32 %v1362_v22, %v1348_v11  ;;  %v3079_v34 = vadd.f32 %v3014_v17, %v1228_v30 }
 0x3bb   : > { %v1352_v44 = vmul.f32 0.0, %v3075_v29  ;;  %v1389_v48 = vmul.f32 %v1351_v35, %v1351_v35 }
 0x3bc   : > { %v1364_v36 = vadd.f32 %v1363_v33, %v1349_v32  ;;  %v1387_v37 = vmul.f32 %v1349_v32, %v1349_v32  ;;  %v1401_v40 = vadd.f32 %v1400_v31, %v1386_v28  ;;  %v1350_v41 = vmul.f32 0.0, %v3079_v34 }
 0x3bd   : > { %v1390_v51 = vmul.f32 %v1352_v44, %v1352_v44 }
 0x3be   : > { %v1402_v43 = vadd.f32 %v1401_v40, %v1387_v37  ;;  %v1365_v45 = vadd.f32 %v1364_v36, %v1350_v41  ;;  %v1388_v47 = vmul.f32 %v1350_v41, %v1350_v41 }
 0x3c0   : > { %v1366_v49 = vadd.f32 %v1365_v45, %v1351_v35  ;;  %v1403_v50 = vadd.f32 %v1402_v43, %v1388_v47 }
 0x3c2   : > { %v1367_v52 = vadd.f32 %v1366_v49, %v1352_v44  ;;  %v1404_v53 = vadd.f32 %v1403_v50, %v1389_v48 }
 0x3c4   : > { %v1368_v17 = vrot.slane %v1367_v52, 4  ;;  %v1405_v54 = vadd.f32 %v1404_v53, %v1390_v51 }
 0x3c6   : > { %v1369_v55 = vadd.f32 %v1368_v17, %v1367_v52  ;;  %v1406_v57 = vrot.slane %v1405_v54, 4  ;;  %v1933_v52 = vld [vmem:[%s569_s21] ss:$0 sm:$0xff]  ;;  %s3272_s21 = sld [smem:[#allocation36_spill]] (!%p1934_p6) }
 0x3c8   : > { %v1370_v58 = vrot.slane %v1369_v55, 2  ;;  %v1407_v59 = vadd.f32 %v1406_v57, %v1405_v54 }
 0x3ca   : > { %v1371_v60 = vadd.f32 %v1370_v58, %v1369_v55  ;;  %v1408_v62 = vrot.slane %v1407_v59, 2 }
 0x3cc   : > { %v1372_v63 = vrot.slane %v1371_v60, 1  ;;  %v1409_v1 = vadd.f32 %v1408_v62, %v1407_v59 }
 0x3ce   : > { %v1373_v2 = vadd.f32 %v1372_v63, %v1371_v60  ;;  %v1410_v3 = vrot.slane %v1409_v1, 1 }
 0x3d0   : > { %v1374_v4 = vmul.f32 0.0625, %v1373_v2  ;;  %v1411_v6 = vadd.f32 %v1410_v3, %v1409_v1 }
 0x3d2   : > { %v1412_v7 = vmul.f32 0.0625, %v1411_v6  ;;  %v1413_v8 = vmul.f32 %v1374_v4, %v1374_v4  ;;  %v1416_v9 = vsub.f32 %v3020_v21, %v1374_v4  ;;  %v1417_v10 = vsub.f32 %v3027_v26, %v1374_v4 }
 0x3d3   : > { %v1418_v11 = vsub.f32 %v3017_v19, %v1374_v4  ;;  %v1419_v12 = vsub.f32 %v3023_v23, %v1374_v4  ;;  %v1420_v13 = vsub.f32 %v3040_v39, %v1374_v4  ;;  %v1421_v14 = vsub.f32 %v3047_v46, %v1374_v4 }
 0x3d4   : > { %v1414_v15 = vsub.f32 %v1412_v7, %v1413_v8  ;;  %v1422_v18 = vsub.f32 %v3037_v38, %v1374_v4  ;;  %v1423_v20 = vsub.f32 %v3043_v42, %v1374_v4  ;;  %v1424_v22 = vsub.f32 %v3056_v61, %v1374_v4 }
 0x3d5   : > { %v1425_v21 = vsub.f32 %v3063_v5, %v1374_v4  ;;  %v1426_v26 = vsub.f32 %v3053_v56, %v1374_v4  ;;  %v1427_v19 = vsub.f32 %v3059_v0, %v1374_v4  ;;  %v1428_v23 = vsub.f32 %v3072_v25, %v1374_v4 }
 0x3d6   : > { %v1415_v24 = vmax.f32 %v1414_v15, 0.0  ;;  %v1429_v39 = vsub.f32 %v3079_v34, %v1374_v4  ;;  %v1430_v46 = vsub.f32 %v3069_v16, %v1374_v4  ;;  %v1431_v38 = vsub.f32 %v3075_v29, %v1374_v4  ;;  %v1932_v16 = vld [vmem:[%s566_s19] ss:$0 sm:$0xff] }
 0x3d7   : > { %v1514_v61 = vstv %s1513_s18 }
 0x3d8   : > { %v1432_v27 = vadd.f32 1e-05, %v1415_v24  ;;  %vm3111_vm0 = vcmp.eq.s32.totalorder %v1514_v61, 1 }
 0x3da   : > { %2294 = vrsqrt.f32 %v1432_v27 }
 0x3e4   : > { %v2295_v42 = vpop.eup %2294 }
 0x3e5   : > { %v1434_v5 = vmul.f32 %v2295_v42, %v1416_v9  ;;  %v1435_v56 = vmul.f32 %v2295_v42, %v1417_v10  ;;  %v1436_v28 = vmul.f32 %v2295_v42, %v1418_v11  ;;  %v1437_v0 = vmul.f32 %v2295_v42, %v1419_v12 }
 0x3e6   : > { %v1438_v30 = vmul.f32 %v2295_v42, %v1420_v13  ;;  %v1439_v25 = vmul.f32 %v2295_v42, %v1421_v14  ;;  %v1440_v31 = vmul.f32 %v2295_v42, %v1422_v18  ;;  %v1441_v32 = vmul.f32 %v2295_v42, %v1423_v20 }
 0x3e7   : > { %v1442_v29 = vmul.f32 %v2295_v42, %v1424_v22  ;;  %v1443_v33 = vmul.f32 %v2295_v42, %v1425_v21  ;;  %v1444_v34 = vmul.f32 %v2295_v42, %v1426_v26  ;;  %v1445_v35 = vmul.f32 %v2295_v42, %v1427_v19 }
 0x3e8   : > { %v1446_v36 = vmul.f32 %v2295_v42, %v1428_v23  ;;  %v1447_v37 = vmul.f32 %v2295_v42, %v1429_v39  ;;  %v1448_v40 = vmul.f32 %v2295_v42, %v1430_v46  ;;  %v1449_v41 = vmul.f32 %v2295_v42, %v1431_v38 }
 0x3e9   : > { %v1457_v43 = vmul.f32 %v1932_v16, %v1434_v5  ;;  %v1458_v44 = vmul.f32 %v1932_v16, %v1435_v56  ;;  %v1459_v45 = vmul.f32 %v1932_v16, %v1436_v28  ;;  %v1460_v47 = vmul.f32 %v1932_v16, %v1437_v0 }
 0x3ea   : > { %v1461_v48 = vmul.f32 %v1932_v16, %v1438_v30  ;;  %v1462_v49 = vmul.f32 %v1932_v16, %v1439_v25  ;;  %v1463_v50 = vmul.f32 %v1932_v16, %v1440_v31  ;;  %v1464_v51 = vmul.f32 %v1932_v16, %v1441_v32 }
 0x3eb   : > { %v1465_v17 = vmul.f32 %v1932_v16, %v1442_v29  ;;  %v1466_v54 = vmul.f32 %v1932_v16, %v1443_v33  ;;  %v1467_v55 = vmul.f32 %v1932_v16, %v1444_v34  ;;  %v1468_v57 = vmul.f32 %v1932_v16, %v1445_v35 }
 0x3ec   : > { %v1469_v58 = vmul.f32 %v1932_v16, %v1446_v36  ;;  %v1470_v59 = vmul.f32 %v1932_v16, %v1447_v37  ;;  %v1471_v60 = vmul.f32 %v1932_v16, %v1448_v40  ;;  %v1472_v62 = vmul.f32 %v1932_v16, %v1449_v41 }
 0x3ed   : > { %v1480_v63 = vadd.f32 %v1933_v52, %v1457_v43  ;;  %v1481_v1 = vadd.f32 %v1933_v52, %v1458_v44  ;;  %v1482_v2 = vadd.f32 %v1933_v52, %v1459_v45  ;;  %v1483_v3 = vadd.f32 %v1933_v52, %v1460_v47 }
 0x3ee   : > { %v1484_v4 = vadd.f32 %v1933_v52, %v1461_v48  ;;  %v1485_v6 = vadd.f32 %v1933_v52, %v1462_v49  ;;  %v1486_v7 = vadd.f32 %v1933_v52, %v1463_v50  ;;  %v1487_v8 = vadd.f32 %v1933_v52, %v1464_v51 }
 0x3ef   : > { %v1488_v9 = vadd.f32 %v1933_v52, %v1465_v17  ;;  %v1489_v10 = vadd.f32 %v1933_v52, %v1466_v54  ;;  %v1490_v11 = vadd.f32 %v1933_v52, %v1467_v55  ;;  %v1491_v12 = vadd.f32 %v1933_v52, %v1468_v57  ;;  %v2296_v57 = vld [vmem:[#allocation14] sm:$0xff] (!%p1934_p6)  }
 0x3f0   : > { %v1492_v13 = vadd.f32 %v1933_v52, %v1469_v58  ;;  %v1493_v14 = vadd.f32 %v1933_v52, %v1470_v59  ;;  %v1494_v15 = vadd.f32 %v1933_v52, %v1471_v60  ;;  %v1495_v18 = vadd.f32 %v1933_v52, %v1472_v62  ;;  %v2297_v58 = vld [vmem:[#allocation14 + $0x8] sm:$0xff] (!%p1934_p6)   ;;  %v2298_v60 = vld [vmem:[#allocation14 + $0x10] sm:$0xff] (!%p1934_p6)  }
 0x3f1   : > { %v1497_v20 = vmax.f32 %v1480_v63, 0.0  ;;  %v1498_v22 = vmax.f32 %v1481_v1, 0.0  ;;  %v1499_v21 = vmax.f32 %v1482_v2, 0.0  ;;  %v1500_v26 = vmax.f32 %v1483_v3, 0.0 }
 0x3f2   : > { %v1501_v19 = vmax.f32 %v1484_v4, 0.0  ;;  %v1502_v23 = vmax.f32 %v1485_v6, 0.0  ;;  %v1503_v24 = vmax.f32 %v1486_v7, 0.0  ;;  %v1504_v39 = vmax.f32 %v1487_v8, 0.0 }
 0x3f3   : > { %v1505_v46 = vmax.f32 %v1488_v9, 0.0  ;;  %v1506_v38 = vmax.f32 %v1489_v10, 0.0  ;;  %v1507_v27 = vmax.f32 %v1490_v11, 0.0  ;;  %v1508_v42 = vmax.f32 %v1491_v12, 0.0 }
 0x3f4   : > { %v1509_v61 = vmax.f32 %v1492_v13, 0.0  ;;  %v1510_v5 = vmax.f32 %v1493_v14, 0.0  ;;  %v1511_v56 = vmax.f32 %v1494_v15, 0.0  ;;  %v1512_v28 = vmax.f32 %v1495_v18, 0.0 }
 0x3f5   : > { %v1516_v0 = vsel %vm3111_vm0, %v1480_v63, %v1497_v20  ;;  %v1517_v30 = vsel %vm3111_vm0, %v1481_v1, %v1498_v22  ;;  %v1518_v25 = vsel %vm3111_vm0, %v1482_v2, %v1499_v21  ;;  %v1519_v31 = vsel %vm3111_vm0, %v1483_v3, %v1500_v26  ;;  %v2299_v63 = vld [vmem:[#allocation14 + $0x18] sm:$0xff] (!%p1934_p6)   ;;  %v2300_v2 = vld [vmem:[#allocation14 + $0x20] sm:$0xff] (!%p1934_p6)  }
 0x3f6   : > { %v1520_v32 = vsel %vm3111_vm0, %v1484_v4, %v1501_v19  ;;  %v1521_v16 = vsel %vm3111_vm0, %v1485_v6, %v1502_v23  ;;  %v1522_v29 = vsel %vm3111_vm0, %v1486_v7, %v1503_v24  ;;  %v1523_v33 = vsel %vm3111_vm0, %v1487_v8, %v1504_v39  ;;  %v2301_v4 = vld [vmem:[#allocation14 + $0x28] sm:$0xff] (!%p1934_p6)   ;;  %v2302_v7 = vld [vmem:[#allocation14 + $0x30] sm:$0xff] (!%p1934_p6)  }
 0x3f7   : > { %v1524_v34 = vsel %vm3111_vm0, %v1488_v9, %v1505_v46  ;;  %v1525_v35 = vsel %vm3111_vm0, %v1489_v10, %v1506_v38  ;;  %v1526_v36 = vsel %vm3111_vm0, %v1490_v11, %v1507_v27  ;;  %v1527_v37 = vsel %vm3111_vm0, %v1491_v12, %v1508_v42  ;;  %v1551_v9 = vld [vmem:[%s3272_s21] sm:$0xf] (!%p1934_p6)  ;;  %v2303_v10 = vld [vmem:[#allocation14 + $0x38] sm:$0xff] (!%p1934_p6)  }
 0x3f8   : > { %v1528_v40 = vsel %vm3111_vm0, %v1492_v13, %v1509_v61  ;;  %v1529_v41 = vsel %vm3111_vm0, %v1493_v14, %v1510_v5  ;;  %v1530_v43 = vsel %vm3111_vm0, %v1494_v15, %v1511_v56  ;;  %v1531_v44 = vsel %vm3111_vm0, %v1495_v18, %v1512_v28  ;;  %1550 = sbr.rel (%p1934_p6) target bundleno = 1487 (0x5cf), region = 105  ;;  %v1935_v18 = vld [vmem:[%s3273_s20] ss:$0 sm:$0xff] (!%p1934_p6) }
 0x3f9   : > { %v1532_v45 = vpack.c.bf16 %v1517_v30, %v1516_v0  ;;  %v1533_v47 = vpack.c.bf16 %v1519_v31, %v1518_v25  ;;  %v1534_v48 = vpack.c.bf16 %v1521_v16, %v1520_v32  ;;  %v1535_v49 = vpack.c.bf16 %v1523_v33, %v1522_v29 }
 0x3fa   : > { %v1536_v50 = vpack.c.bf16 %v1525_v35, %v1524_v34  ;;  %v1537_v51 = vpack.c.bf16 %v1527_v37, %v1526_v36  ;;  %v1538_v52 = vpack.c.bf16 %v1529_v41, %v1528_v40  ;;  %v1539_v17 = vpack.c.bf16 %v1531_v44, %v1530_v43 }
 0x3fb   : > { %1540 = vst [vmem:[#allocation2] sm:$0xff] %v1532_v45  ;;  %1541 = vst [vmem:[#allocation2 + $0x8] sm:$0xff] %v1533_v47  ;;  %v2578_v54 = vmov (!%p1934_p6), 0.0  }
 0x3fc   : > { %1542 = vst [vmem:[#allocation2 + $0x10] sm:$0xff] %v1534_v48  ;;  %1543 = vst [vmem:[#allocation2 + $0x18] sm:$0xff] %v1535_v49  ;;  %2114 = vmatprep.subr.bf16.mxu0 (!%p1934_p6), %v2578_v54  ;;  %2130 = vmatprep.mubr.msk.bf16.mxu0 (!%p1934_p6), %vm2579_vm1, %v2578_v54 }
 0x3fd   : > { %1544 = vst [vmem:[#allocation2 + $0x20] sm:$0xff] %v1536_v50  ;;  %1545 = vst [vmem:[#allocation2 + $0x28] sm:$0xff] %v1537_v51  ;;  %2134 = vmatprep.subr.bf16.mxu1 (!%p1934_p6), %v2578_v54  ;;  %2150 = vmatprep.mubr.msk.bf16.mxu1 (!%p1934_p6), %vm2579_vm1, %v2578_v54 }
 0x3fe   : > { %1546 = vst [vmem:[#allocation2 + $0x30] sm:$0xff] %v1538_v52  ;;  %1547 = vst [vmem:[#allocation2 + $0x38] sm:$0xff] %v1539_v17  ;;  %2135 = vmatpush3.bf16.msra.mxu1 (!%p1934_p6), %v2296_v57 }
 0x3ff   : > { %2136 = vmatprep.subr.bf16.mxu1 %v2578_v54 }
 0x402   : > { %v1552_v53 = vld [vmem:[#allocation2] sm:$0xff]  ;;  %v1553_v55 = vld [vmem:[#allocation2 + $0x8] sm:$0xff]  ;;  %2137 = vmatpush3.bf16.msra.mxu1 %v2297_v58 }
 0x403   : > { %2115 = vmatpush3.bf16.msra.mxu0 %v1552_v53  ;;  %v1554_v59 = vld [vmem:[#allocation2 + $0x10] sm:$0xff]  ;;  %2138 = vmatprep.subr.bf16.mxu1 %v2578_v54  ;;  %v1555_v62 = vld [vmem:[#allocation2 + $0x18] sm:$0xff] }
 0x404   : > { %2116 = vmatprep.subr.bf16.mxu0 %v2578_v54  ;;  %v1556_v1 = vld [vmem:[#allocation2 + $0x20] sm:$0xff]  ;;  %v1557_v3 = vld [vmem:[#allocation2 + $0x28] sm:$0xff] }
 0x405   : > { %v1558_v6 = vld [vmem:[#allocation2 + $0x30] sm:$0xff]  ;;  %v1559_v8 = vld [vmem:[#allocation2 + $0x38] sm:$0xff] }
 0x406   : > { %2139 = vmatpush3.bf16.msra.mxu1 %v2298_v60 }
 0x407   : > { %2117 = vmatpush3.bf16.msra.mxu0 %v1553_v55  ;;  %2140 = vmatprep.subr.bf16.mxu1 %v2578_v54 }
 0x408   : > { %2118 = vmatprep.subr.bf16.mxu0 %v2578_v54 }
 0x40a   : > { %2141 = vmatpush3.bf16.msra.mxu1 %v2299_v63 }
 0x40b   : > { %2119 = vmatpush3.bf16.msra.mxu0 %v1554_v59  ;;  %2142 = vmatprep.subr.bf16.mxu1 %v2578_v54 }
 0x40c   : > { %2120 = vmatprep.subr.bf16.mxu0 %v2578_v54 }
 0x40e   : > { %2143 = vmatpush3.bf16.msra.mxu1 %v2300_v2 }
 0x40f   : > { %2121 = vmatpush3.bf16.msra.mxu0 %v1555_v62  ;;  %2144 = vmatprep.subr.bf16.mxu1 %v2578_v54 }
 0x410   : > { %2122 = vmatprep.subr.bf16.mxu0 %v2578_v54 }
 0x412   : > { %2145 = vmatpush3.bf16.msra.mxu1 %v2301_v4 }
 0x413   : > { %2123 = vmatpush3.bf16.msra.mxu0 %v1556_v1  ;;  %2146 = vmatprep.subr.bf16.mxu1 %v2578_v54 }
 0x414   : > { %2124 = vmatprep.subr.bf16.mxu0 %v2578_v54 }
 0x416   : > { %2147 = vmatpush3.bf16.msra.mxu1 %v2302_v7 }
 0x417   : > { %2125 = vmatpush3.bf16.msra.mxu0 %v1557_v3  ;;  %2148 = vmatprep.subr.bf16.mxu1 %v2578_v54 }
 0x418   : > { %2126 = vmatprep.subr.bf16.mxu0 %v2578_v54 }
 0x41a   : > { %2149 = vmatpush3.bf16.msra.mxu1 %v2303_v10 }
 0x41b   : > { %2127 = vmatpush3.bf16.msra.mxu0 %v1558_v6 }
 0x41c   : > { %2128 = vmatprep.subr.bf16.mxu0 %v2578_v54 }
 0x41f   : > { %2129 = vmatpush3.bf16.msra.mxu0 %v1559_v8 }
 0x422   : > { %2131 = vmatmul.mubr.bf16.vlgmr.msra.gmra.mrb[0].mxu0 %v1551_v9 }
 0x4f5   : > { %v1594_v11 = vpop.f32.mrb[0].mxu0 }
 0x4f6   : > { %v1600_v12 = vpack.c.bf16 %v1594_v11, %v1594_v11  ;;  %v2132_v13 = vpop.f32.mrb[1].mxu0 }
 0x4f7   : > { %v1597_v14 = vpop.f32.mrb[2].mxu0 }
 0x4f8   : > { %v2133_v15 = vpop.f32.mrb[3].mxu0  ;;  %2151 = vmatmul.mubr.bf16.vlgmr.msra.gmra.mrb[0].mxu1 %v1600_v12 }
 0x5cb   : > { %v1706_v20 = vpop.f32.mrb[0].mxu1 }
 0x5cc   : > { %v1707_v22 = vadd.f32 %v1935_v18, %v1706_v20  ;;  %v2152_v21 = vpop.f32.mrb[1].mxu1 }
 0x5cd   : > { %v1709_v26 = vpop.f32.mrb[2].mxu1 }
 0x5ce   : > { %1712 = vst [vmem:[#allocation15] sm:$0xff] %v1707_v22  ;;  %v2153_v19 = vpop.f32.mrb[3].mxu1 }
 0x5cf PF: > { %p2210_p4 = scmp.eq.s32.totalorder %s2683_s0, 1  ;;  %s2580_s2 = smov [#allocation15]  }
 0x5d0   : > { %s1720_s4 = sshll.u32 %s2580_s2, 4  ;;  %s1721_s4 = int_to_ptr.vmem [resolvable:$true] %s1720_s4 }
 0x5d1   : > { %s2472_s16 = scalar_lea.vmem %s1721_s4, 128  ;;  %p2479_p7 = scmp.lt.s32.totalorder %s1721_s4, %s1721_s4 }
 0x5d2   : > { %p2473_p1 = scmp.ne.s32.totalorder %s1721_s4, %s2472_s16  ;;  %p2480_p9 = scmp.lt.s32.totalorder %s2472_s16, %s2472_s16 }
 0x5d4   : > { %p2474_p3 = pnand %p2473_p1, %p2210_p4  ;;  %p2481_p5 = por %p2480_p9, %p2479_p7 }
 0x5d6   : > { %p2475_p12 = pneg %p2474_p3 }
 0x5d8   : > { %p2482_p8 = pnand %p2481_p5, %p2475_p12 }
 0x5da   : > { %2485 = shalt.err (!%p2482_p8)
}
 0x5db   : > { %s3274_s24 = sld [smem:[#allocation39_spill]] }
 0x5e1   : > { %s2486_s10 = scalar_lea.hbm %s3274_s24, 128 }
 0x5e2   : > { %p2487_p11 = scmp.ne.s32.totalorder %s3274_s24, %s2486_s10  ;;  %p2492_p10 = scmp.lt.u32.totalorder %s2486_s10, %s3274_s24 }
 0x5e4   : > { %p2488_p13 = pnand %p2487_p11, %p2210_p4 }
 0x5e6   : > { %p2489_p0 = pneg %p2488_p13 }
 0x5e8   : > { %p2494_p2 = pnand %p2492_p10, %p2489_p0 }
 0x5ea   : > { %2497 = shalt.err (!%p2494_p2)
}
 0x5eb   : > { %2185 = dma.vmem_to_hbm [thread:$0]  (%p2210_p4), %s1721_s4, 128, %s3274_s24, [#allocation8]  }
 0x5ec   : > { %2541 = dma.done.wait (%p2210_p4), [#allocation8], 128  }
 0x5ed   : > { %2543 = vsyncadd (%p2210_p4), [#allocation8], 4294967168 }
 0x5ee PF: > { %s32_s15 = sadd.s32 1, %s2566_s15   ;;  %s3275_s9 = sld [smem:[#allocation27_spill]] }
 0x5ef   : > { %p29_p6 = scmp.ge.s32.totalorder %s32_s15, 4   ;;  %s3276_s29 = sld [smem:[#allocation29_spill]] }
 0x5f0   : > { %s3277_s26 = sld [smem:[#allocation28_spill]]  ;;  %s3278_s27 = smov %s2550_s28 }
 0x5f1   : > { %s3280_s30 = smov %s2562_s14  ;;  %31 = sbr.rel (!%p29_p6) target bundleno = 20 (0x14), region = 169 }
 0x5f4   : > { %s3279_s28 = smov %s3275_s9 }
 0x5f6   : > { %s3281_s14 = smov %s3277_s26 }
 0x5f8   :  { %1733 = vsyncpa [#allocation7], 1 }
 0x5f9   :  { %1735 = vsyncpa [#allocation7 + $0x1], 1 }
 0x5fa   :  { %1736 = vsyncpa [#allocation10], 1 }
 0x5fb   :  { %1738 = vsyncpa [#allocation10 + $0x1], 1 }
 0x5fc   :  { %1739 = vsyncpa [#allocation13], 1 }
 0x5fd   :  { %1741 = vsyncpa [#allocation13 + $0x1], 1 }
 0x5fe   :  { %1742 = vsyncpa [#allocation8], 1 }
 0x5ff   :  { %1744 = vsyncpa [#allocation8 + $0x1], 1 }

</bundles_post_ra>
